<compile_context>
chip_gen: v5e
topology: v5e:2x2
jax: 0.10.0
libtpu: 0.0.40
codegen_flags: <defaults>
</compile_context>

<pallas_src>
import functools
import math

import jax
import jax.numpy as jnp
from jax.experimental import pallas as pl
from jax.experimental.pallas import tpu as pltpu


def _layer_norm(v, gamma, beta, eps=1e-5):
    mu = jnp.mean(v, axis=-1, keepdims=True)
    var = jnp.mean((v - mu) ** 2, axis=-1, keepdims=True)
    return (v - mu) * jax.lax.rsqrt(var + eps) * gamma + beta


def encoder_block_kernel(
    x_ref, mask_ref,
    g1_ref, be1_ref, g2_ref, be2_ref,
    wq_ref, bq_ref, wk_ref, bk_ref, wv_ref, bv_ref,
    wp_ref, bp_ref, w1_ref, bm1_ref, w2_ref, bm2_ref,
    out_ref,
    *, n_head, seq_per_step, seq_len, compute_dtype,
):
    bt, T = seq_per_step, seq_len
    x = x_ref[...]                              # (R, C) token slab, R = bt*T
    R, C = x.shape
    hd = C // n_head
    cd = compute_dtype

    def dense(a, w_ref, b_ref):
        # bf16 operands on the MXU, f32 accumulate; elementwise math stays f32.
        return jnp.dot(a.astype(cd), w_ref[...].astype(cd),
                       preferred_element_type=jnp.float32) + b_ref[...]

    ln1 = _layer_norm(x, g1_ref[...], be1_ref[...])
    ln2 = _layer_norm(x, g2_ref[...], be2_ref[...])

    # --- attention: projections over the full token slab ---
    q = dense(ln1, wq_ref, bq_ref)              # (R, C) f32
    k = dense(ln1, wk_ref, bk_ref)
    v = dense(ln1, wv_ref, bv_ref)

    def split_heads(a):
        # (R, C) -> (n_head*bt, T, hd); batch index = h*bt + b
        parts = [a[:, h * hd:(h + 1) * hd] for h in range(n_head)]
        return jnp.concatenate(parts, axis=0).reshape(n_head * bt, T, hd)

    qs = split_heads(q).astype(cd)
    ks = split_heads(k).astype(cd)
    vs = split_heads(v).astype(cd)

    maskf = mask_ref[...]                       # (bt, T, T), 1.0 keep / 0.0 masked
    mask_all = jnp.concatenate([maskf] * n_head, axis=0)   # (n_head*bt, T, T)

    scale = 1.0 / math.sqrt(hd)
    att = jnp.einsum("btd,bsd->bts", qs, ks,
                     preferred_element_type=jnp.float32) * scale
    att = jnp.where(mask_all == 0.0, jnp.float32(-1e9), att)
    att = att - jnp.max(att, axis=-1, keepdims=True)
    p = jnp.exp(att)
    p = p * pl.reciprocal(jnp.sum(p, axis=-1, keepdims=True), approx=True)

    ctx = jnp.einsum("bts,bsd->btd", p.astype(cd), vs,
                     preferred_element_type=jnp.float32)   # (n_head*bt, T, hd)
    ctx = ctx.reshape(n_head * R, hd)
    y = jnp.concatenate([ctx[h * R:(h + 1) * R] for h in range(n_head)], axis=-1)

    attn_out = dense(y, wp_ref, bp_ref)

    # --- MLP: Linear -> exact (erf) GELU -> Linear ---
    h1 = dense(ln2, w1_ref, bm1_ref)
    h1 = 0.5 * h1 * (1.0 + jax.lax.erf(h1 * (1.0 / math.sqrt(2.0))))
    mlp_out = dense(h1, w2_ref, bm2_ref)

    out_ref[...] = x + attn_out + mlp_out


def _pick_seq_block(B, T, target_rows=256, min_rows=128):
    """Sequences per grid step: big token slabs, sublane-aligned row blocks."""
    def legal(bt):
        return B % bt == 0 and ((bt * T) % 8 == 0 or bt == B)

    cands = [bt for bt in range(1, B + 1) if legal(bt) and bt * T <= target_rows]
    bt = max(cands) if cands else B
    if bt == B and B > 1:
        # Prefer >=2 parallel grid steps (v7x has 2 TensorCores) as long as the
        # per-step token slab stays large enough to amortize pipeline overhead.
        smaller = [c for c in cands if c < B and c * T >= min_rows]
        if smaller:
            bt = max(smaller)
    return bt


def transformer_encoder_block(x, x_padding_judge, params, *, n_head, is_crystal,
                              compute_dtype=jnp.bfloat16, seq_per_step=None):
    B, T, C = x.shape
    assert C % n_head == 0

    bt = _pick_seq_block(B, T) if seq_per_step is None else seq_per_step
    assert B % bt == 0
    grid = (B // bt,)
    rows = bt * T

    # Flatten tokens: one (rows, C) slab per grid step for all dense work.
    x2 = x.reshape(B * T, C)

    # Precompute the per-sequence (T, T) keep-mask on the host (same for every
    # head; attn_drop(ones) is identity in eval mode), incl. the crystal rule.
    valid = 1.0 - x_padding_judge.astype(jnp.float32)      # (B, T)
    mask = valid[:, :, None] * valid[:, None, :]           # (B, T, T)
    if is_crystal:
        mask = mask.at[:, 0, 7:].set(0.0)

    p = params
    kernel = functools.partial(
        encoder_block_kernel, n_head=n_head, seq_per_step=bt, seq_len=T,
        compute_dtype=compute_dtype)

    def full(shape):
        zeros = (0,) * len(shape)
        return pl.BlockSpec(shape, lambda i: zeros)

    in_specs = [
        pl.BlockSpec((rows, C), lambda i: (i, 0)),          # token slab
        pl.BlockSpec((bt, T, T), lambda i: (i, 0, 0)),      # keep-mask
        full((1, C)), full((1, C)),                         # ln1 gamma/beta
        full((1, C)), full((1, C)),                         # ln2 gamma/beta
        full((C, C)), full((1, C)),                         # Wq, bq
        full((C, C)), full((1, C)),                         # Wk, bk
        full((C, C)), full((1, C)),                         # Wv, bv
        full((C, C)), full((1, C)),                         # Wproj, bproj
        full((C, 4 * C)), full((1, 4 * C)),                 # W1, b1
        full((4 * C, C)), full((1, C)),                     # W2, b2
    ]

    grid_spec = pltpu.PrefetchScalarGridSpec(
        num_scalar_prefetch=0,
        grid=grid,
        in_specs=in_specs,
        out_specs=pl.BlockSpec((rows, C), lambda i: (i, 0)),
    )

    out2 = pl.pallas_call(
        kernel,
        out_shape=jax.ShapeDtypeStruct((B * T, C), jnp.float32),
        grid_spec=grid_spec,
        compiler_params=pltpu.CompilerParams(
            dimension_semantics=("parallel",)),
    )(x2, mask,
      p["g1"], p["be1"], p["g2"], p["be2"],
      p["wq"], p["bq"], p["wk"], p["bk"], p["wv"], p["bv"],
      p["wp"], p["bp"], p["w1"], p["bm1"], p["w2"], p["bm2"])

    return out2.reshape(B, T, C)


def reference_jax(x, pad, p, n_head, is_crystal):
    """Pure-JAX f32 reference mirroring the PyTorch forward (eval mode)."""
    B, T, C = x.shape
    hd = C // n_head
    ln1 = _layer_norm(x, p["g1"], p["be1"])
    ln2 = _layer_norm(x, p["g2"], p["be2"])
    valid = 1.0 - pad                                        # (B, T)
    mask = valid[:, :, None] * valid[:, None, :]             # (B, T, T)
    mask = jnp.tile(mask[:, None], (1, n_head, 1, 1))        # (B, H, T, T)
    if is_crystal:
        mask = mask.at[:, :, 0, 7:].set(0.0)

    def proj(a, w, b):
        return a @ w + b

    def split(a):
        return a.reshape(B, T, n_head, hd).transpose(0, 2, 1, 3)

    q = split(proj(ln1, p["wq"], p["bq"]))
    k = split(proj(ln1, p["wk"], p["bk"]))
    v = split(proj(ln1, p["wv"], p["bv"]))
    att = jnp.einsum("bhqd,bhkd->bhqk", q, k) / math.sqrt(hd)
    att = jnp.where(mask == 0.0, -1e9, att)
    att = jax.nn.softmax(att, axis=-1)
    y = jnp.einsum("bhqk,bhkd->bhqd", att, v)
    y = y.transpose(0, 2, 1, 3).reshape(B, T, C)
    attn_out = proj(y, p["wp"], p["bp"])
    h1 = proj(ln2, p["w1"], p["bm1"])
    h1 = 0.5 * h1 * (1.0 + jax.lax.erf(h1 / math.sqrt(2.0)))
    mlp_out = proj(h1, p["w2"], p["bm2"])
    return x + attn_out + mlp_out


if __name__ == "__main__":
    B, T, C, H = 2, 8, 32, 4

    key = jax.random.PRNGKey(0)
    keys = jax.random.split(key, 16)

    x = jax.random.normal(keys[0], (B, T, C), dtype=jnp.float32)

    # padding judge: 1.0 marks padded positions (as in the PyTorch module)
    pad = jnp.zeros((B, T), dtype=jnp.float32)
    pad = pad.at[0, 6:].set(1.0)
    pad = pad.at[1, 5:].set(1.0)

    def w(k, shape, scale=0.02):
        return (scale * jax.random.normal(k, shape)).astype(jnp.float32)

    params = {
        "g1": jnp.ones((1, C), jnp.float32), "be1": jnp.zeros((1, C), jnp.float32),
        "g2": jnp.ones((1, C), jnp.float32), "be2": jnp.zeros((1, C), jnp.float32),
        "wq": w(keys[1], (C, C)), "bq": w(keys[2], (1, C)),
        "wk": w(keys[3], (C, C)), "bk": w(keys[4], (1, C)),
        "wv": w(keys[5], (C, C)), "bv": w(keys[6], (1, C)),
        "wp": w(keys[7], (C, C)), "bp": w(keys[8], (1, C)),
        "w1": w(keys[9], (C, 4 * C)), "bm1": w(keys[10], (1, 4 * C)),
        "w2": w(keys[11], (4 * C, C)), "bm2": w(keys[12], (1, C)),
    }

    is_crystal = True

    out = transformer_encoder_block(x, pad, params, n_head=H, is_crystal=is_crystal)
    out = jax.block_until_ready(out)

    ref = reference_jax(x, pad, params, H, is_crystal)
    assert out.shape == (B, T, C)
    # Tolerance relaxed vs pure-f32 because MXU operands are cast to bf16
    # (accumulation stays f32).
    assert jnp.allclose(out, ref, atol=1e-2, rtol=1e-2), "mismatch vs JAX reference"

    print("KERNEL_OK")
</pallas_src>

<mosaic_0001>
module attributes {stable_mosaic.version = 11 : i64} {
  func.func @encoder_block_kernel(%arg0: i32, %arg1: memref<16x32xf32, #tpu.memory_space<vmem>>, %arg2: memref<2x8x8xf32, #tpu.memory_space<vmem>>, %arg3: memref<1x32xf32, #tpu.memory_space<vmem>>, %arg4: memref<1x32xf32, #tpu.memory_space<vmem>>, %arg5: memref<1x32xf32, #tpu.memory_space<vmem>>, %arg6: memref<1x32xf32, #tpu.memory_space<vmem>>, %arg7: memref<32x32xf32, #tpu.memory_space<vmem>>, %arg8: memref<1x32xf32, #tpu.memory_space<vmem>>, %arg9: memref<32x32xf32, #tpu.memory_space<vmem>>, %arg10: memref<1x32xf32, #tpu.memory_space<vmem>>, %arg11: memref<32x32xf32, #tpu.memory_space<vmem>>, %arg12: memref<1x32xf32, #tpu.memory_space<vmem>>, %arg13: memref<32x32xf32, #tpu.memory_space<vmem>>, %arg14: memref<1x32xf32, #tpu.memory_space<vmem>>, %arg15: memref<32x128xf32, #tpu.memory_space<vmem>>, %arg16: memref<1x128xf32, #tpu.memory_space<vmem>>, %arg17: memref<128x32xf32, #tpu.memory_space<vmem>>, %arg18: memref<1x32xf32, #tpu.memory_space<vmem>>, %arg19: memref<16x32xf32, #tpu.memory_space<vmem>>) attributes {dimension_semantics = [#tpu.dimension_semantics<parallel>], iteration_bounds = array<i64: 1>, scalar_prefetch = 0 : i64, scratch_operands = 0 : i64, tpu.core_type = #tpu.core_type<tc>, window_params = [{transform_indices = @transform_0, window_bounds = array<i64: 16, 32>}, {transform_indices = @transform_1, window_bounds = array<i64: 2, 8, 8>}, {pipeline_mode = #tpu.pipeline_mode<synchronous>, transform_indices = @transform_2, window_bounds = array<i64: 1, 32>}, {pipeline_mode = #tpu.pipeline_mode<synchronous>, transform_indices = @transform_3, window_bounds = array<i64: 1, 32>}, {pipeline_mode = #tpu.pipeline_mode<synchronous>, transform_indices = @transform_4, window_bounds = array<i64: 1, 32>}, {pipeline_mode = #tpu.pipeline_mode<synchronous>, transform_indices = @transform_5, window_bounds = array<i64: 1, 32>}, {pipeline_mode = #tpu.pipeline_mode<synchronous>, transform_indices = @transform_6, window_bounds = array<i64: 32, 32>}, {pipeline_mode = #tpu.pipeline_mode<synchronous>, transform_indices = @transform_7, window_bounds = array<i64: 1, 32>}, {pipeline_mode = #tpu.pipeline_mode<synchronous>, transform_indices = @transform_8, window_bounds = array<i64: 32, 32>}, {pipeline_mode = #tpu.pipeline_mode<synchronous>, transform_indices = @transform_9, window_bounds = array<i64: 1, 32>}, {pipeline_mode = #tpu.pipeline_mode<synchronous>, transform_indices = @transform_10, window_bounds = array<i64: 32, 32>}, {pipeline_mode = #tpu.pipeline_mode<synchronous>, transform_indices = @transform_11, window_bounds = array<i64: 1, 32>}, {pipeline_mode = #tpu.pipeline_mode<synchronous>, transform_indices = @transform_12, window_bounds = array<i64: 32, 32>}, {pipeline_mode = #tpu.pipeline_mode<synchronous>, transform_indices = @transform_13, window_bounds = array<i64: 1, 32>}, {pipeline_mode = #tpu.pipeline_mode<synchronous>, transform_indices = @transform_14, window_bounds = array<i64: 32, 128>}, {pipeline_mode = #tpu.pipeline_mode<synchronous>, transform_indices = @transform_15, window_bounds = array<i64: 1, 128>}, {pipeline_mode = #tpu.pipeline_mode<synchronous>, transform_indices = @transform_16, window_bounds = array<i64: 128, 32>}, {pipeline_mode = #tpu.pipeline_mode<synchronous>, transform_indices = @transform_17, window_bounds = array<i64: 1, 32>}, {transform_indices = @transform_18, window_bounds = array<i64: 16, 32>}]} {
    %c0 = arith.constant 0 : index
    %c0_0 = arith.constant 0 : index
    %0 = vector.load %arg1[%c0, %c0_0] : memref<16x32xf32, #tpu.memory_space<vmem>>, vector<16x32xf32>
    %c0_1 = arith.constant 0 : index
    %c0_2 = arith.constant 0 : index
    %1 = vector.load %arg3[%c0_1, %c0_2] : memref<1x32xf32, #tpu.memory_space<vmem>>, vector<1x32xf32>
    %c0_3 = arith.constant 0 : index
    %c0_4 = arith.constant 0 : index
    %2 = vector.load %arg4[%c0_3, %c0_4] : memref<1x32xf32, #tpu.memory_space<vmem>>, vector<1x32xf32>
    %cst = arith.constant dense<0.000000e+00> : vector<16xf32>
    %3 = vector.multi_reduction <add>, %0, %cst [1] : vector<16x32xf32> to vector<16xf32>
    %4 = vector.shape_cast %3 : vector<16xf32> to vector<16x1xf32>
    %cst_5 = arith.constant 3.200000e+01 : f32
    %5 = vector.broadcast %cst_5 : f32 to vector<16x1xf32>
    %6 = arith.divf %4, %5 : vector<16x1xf32>
    %7 = vector.broadcast %6 : vector<16x1xf32> to vector<16x32xf32>
    %8 = arith.subf %0, %7 : vector<16x32xf32>
    %9 = arith.mulf %8, %8 : vector<16x32xf32>
    %cst_6 = arith.constant dense<0.000000e+00> : vector<16xf32>
    %10 = vector.multi_reduction <add>, %9, %cst_6 [1] : vector<16x32xf32> to vector<16xf32>
    %11 = vector.shape_cast %10 : vector<16xf32> to vector<16x1xf32>
    %cst_7 = arith.constant 3.200000e+01 : f32
    %12 = vector.broadcast %cst_7 : f32 to vector<16x1xf32>
    %13 = arith.divf %11, %12 : vector<16x1xf32>
    %14 = vector.broadcast %6 : vector<16x1xf32> to vector<16x32xf32>
    %15 = arith.subf %0, %14 : vector<16x32xf32>
    %cst_8 = arith.constant 9.99999974E-6 : f32
    %16 = vector.broadcast %cst_8 : f32 to vector<16x1xf32>
    %17 = arith.addf %13, %16 : vector<16x1xf32>
    %18 = math.rsqrt %17 : vector<16x1xf32>
    %19 = vector.broadcast %18 : vector<16x1xf32> to vector<16x32xf32>
    %20 = arith.mulf %15, %19 : vector<16x32xf32>
    %21 = vector.broadcast %1 : vector<1x32xf32> to vector<16x32xf32>
    %22 = arith.mulf %20, %21 : vector<16x32xf32>
    %23 = vector.broadcast %2 : vector<1x32xf32> to vector<16x32xf32>
    %24 = arith.addf %22, %23 : vector<16x32xf32>
    %c0_9 = arith.constant 0 : index
    %c0_10 = arith.constant 0 : index
    %25 = vector.load %arg5[%c0_9, %c0_10] : memref<1x32xf32, #tpu.memory_space<vmem>>, vector<1x32xf32>
    %c0_11 = arith.constant 0 : index
    %c0_12 = arith.constant 0 : index
    %26 = vector.load %arg6[%c0_11, %c0_12] : memref<1x32xf32, #tpu.memory_space<vmem>>, vector<1x32xf32>
    %cst_13 = arith.constant dense<0.000000e+00> : vector<16xf32>
    %27 = vector.multi_reduction <add>, %0, %cst_13 [1] : vector<16x32xf32> to vector<16xf32>
    %28 = vector.shape_cast %27 : vector<16xf32> to vector<16x1xf32>
    %cst_14 = arith.constant 3.200000e+01 : f32
    %29 = vector.broadcast %cst_14 : f32 to vector<16x1xf32>
    %30 = arith.divf %28, %29 : vector<16x1xf32>
    %31 = vector.broadcast %30 : vector<16x1xf32> to vector<16x32xf32>
    %32 = arith.subf %0, %31 : vector<16x32xf32>
    %33 = arith.mulf %32, %32 : vector<16x32xf32>
    %cst_15 = arith.constant dense<0.000000e+00> : vector<16xf32>
    %34 = vector.multi_reduction <add>, %33, %cst_15 [1] : vector<16x32xf32> to vector<16xf32>
    %35 = vector.shape_cast %34 : vector<16xf32> to vector<16x1xf32>
    %cst_16 = arith.constant 3.200000e+01 : f32
    %36 = vector.broadcast %cst_16 : f32 to vector<16x1xf32>
    %37 = arith.divf %35, %36 : vector<16x1xf32>
    %38 = vector.broadcast %30 : vector<16x1xf32> to vector<16x32xf32>
    %39 = arith.subf %0, %38 : vector<16x32xf32>
    %cst_17 = arith.constant 9.99999974E-6 : f32
    %40 = vector.broadcast %cst_17 : f32 to vector<16x1xf32>
    %41 = arith.addf %37, %40 : vector<16x1xf32>
    %42 = math.rsqrt %41 : vector<16x1xf32>
    %43 = vector.broadcast %42 : vector<16x1xf32> to vector<16x32xf32>
    %44 = arith.mulf %39, %43 : vector<16x32xf32>
    %45 = vector.broadcast %25 : vector<1x32xf32> to vector<16x32xf32>
    %46 = arith.mulf %44, %45 : vector<16x32xf32>
    %47 = vector.broadcast %26 : vector<1x32xf32> to vector<16x32xf32>
    %48 = arith.addf %46, %47 : vector<16x32xf32>
    %49 = arith.truncf %24 : vector<16x32xf32> to vector<16x32xbf16>
    %c0_18 = arith.constant 0 : index
    %c0_19 = arith.constant 0 : index
    %50 = vector.load %arg7[%c0_18, %c0_19] : memref<32x32xf32, #tpu.memory_space<vmem>>, vector<32x32xf32>
    %51 = arith.truncf %50 : vector<32x32xf32> to vector<32x32xbf16>
    %cst_20 = arith.constant dense<0.000000e+00> : vector<16x32xf32>
    %52 = tpu.matmul %49, %51, %cst_20 {dimension_numbers = #tpu.dot_dimension_numbers<[1], [0], [0], [1], [0, 0, 1, 1], [], []>} : vector<16x32xbf16>, vector<32x32xbf16>, vector<16x32xf32> -> vector<16x32xf32>
    %c0_21 = arith.constant 0 : index
    %c0_22 = arith.constant 0 : index
    %53 = vector.load %arg8[%c0_21, %c0_22] : memref<1x32xf32, #tpu.memory_space<vmem>>, vector<1x32xf32>
    %54 = vector.broadcast %53 : vector<1x32xf32> to vector<16x32xf32>
    %55 = arith.addf %52, %54 : vector<16x32xf32>
    %56 = arith.truncf %24 : vector<16x32xf32> to vector<16x32xbf16>
    %c0_23 = arith.constant 0 : index
    %c0_24 = arith.constant 0 : index
    %57 = vector.load %arg9[%c0_23, %c0_24] : memref<32x32xf32, #tpu.memory_space<vmem>>, vector<32x32xf32>
    %58 = arith.truncf %57 : vector<32x32xf32> to vector<32x32xbf16>
    %cst_25 = arith.constant dense<0.000000e+00> : vector<16x32xf32>
    %59 = tpu.matmul %56, %58, %cst_25 {dimension_numbers = #tpu.dot_dimension_numbers<[1], [0], [0], [1], [0, 0, 1, 1], [], []>} : vector<16x32xbf16>, vector<32x32xbf16>, vector<16x32xf32> -> vector<16x32xf32>
    %c0_26 = arith.constant 0 : index
    %c0_27 = arith.constant 0 : index
    %60 = vector.load %arg10[%c0_26, %c0_27] : memref<1x32xf32, #tpu.memory_space<vmem>>, vector<1x32xf32>
    %61 = vector.broadcast %60 : vector<1x32xf32> to vector<16x32xf32>
    %62 = arith.addf %59, %61 : vector<16x32xf32>
    %63 = arith.truncf %24 : vector<16x32xf32> to vector<16x32xbf16>
    %c0_28 = arith.constant 0 : index
    %c0_29 = arith.constant 0 : index
    %64 = vector.load %arg11[%c0_28, %c0_29] : memref<32x32xf32, #tpu.memory_space<vmem>>, vector<32x32xf32>
    %65 = arith.truncf %64 : vector<32x32xf32> to vector<32x32xbf16>
    %cst_30 = arith.constant dense<0.000000e+00> : vector<16x32xf32>
    %66 = tpu.matmul %63, %65, %cst_30 {dimension_numbers = #tpu.dot_dimension_numbers<[1], [0], [0], [1], [0, 0, 1, 1], [], []>} : vector<16x32xbf16>, vector<32x32xbf16>, vector<16x32xf32> -> vector<16x32xf32>
    %c0_31 = arith.constant 0 : index
    %c0_32 = arith.constant 0 : index
    %67 = vector.load %arg12[%c0_31, %c0_32] : memref<1x32xf32, #tpu.memory_space<vmem>>, vector<1x32xf32>
    %68 = vector.broadcast %67 : vector<1x32xf32> to vector<16x32xf32>
    %69 = arith.addf %66, %68 : vector<16x32xf32>
    %70 = vector.extract_strided_slice %55 {offsets = [0, 0], sizes = [16, 8], strides = [1, 1]} : vector<16x32xf32> to vector<16x8xf32>
    %71 = vector.extract_strided_slice %55 {offsets = [0, 8], sizes = [16, 8], strides = [1, 1]} : vector<16x32xf32> to vector<16x8xf32>
    %72 = vector.extract_strided_slice %55 {offsets = [0, 16], sizes = [16, 8], strides = [1, 1]} : vector<16x32xf32> to vector<16x8xf32>
    %73 = vector.extract_strided_slice %55 {offsets = [0, 24], sizes = [16, 8], strides = [1, 1]} : vector<16x32xf32> to vector<16x8xf32>
    %74 = tpu.concatenate %70, %71, %72, %73 in 0 : vector<16x8xf32>, vector<16x8xf32>, vector<16x8xf32>, vector<16x8xf32> -> vector<64x8xf32>
    %75 = vector.shape_cast %74 : vector<64x8xf32> to vector<8x8x8xf32>
    %76 = arith.truncf %75 : vector<8x8x8xf32> to vector<8x8x8xbf16>
    %77 = vector.extract_strided_slice %62 {offsets = [0, 0], sizes = [16, 8], strides = [1, 1]} : vector<16x32xf32> to vector<16x8xf32>
    %78 = vector.extract_strided_slice %62 {offsets = [0, 8], sizes = [16, 8], strides = [1, 1]} : vector<16x32xf32> to vector<16x8xf32>
    %79 = vector.extract_strided_slice %62 {offsets = [0, 16], sizes = [16, 8], strides = [1, 1]} : vector<16x32xf32> to vector<16x8xf32>
    %80 = vector.extract_strided_slice %62 {offsets = [0, 24], sizes = [16, 8], strides = [1, 1]} : vector<16x32xf32> to vector<16x8xf32>
    %81 = tpu.concatenate %77, %78, %79, %80 in 0 : vector<16x8xf32>, vector<16x8xf32>, vector<16x8xf32>, vector<16x8xf32> -> vector<64x8xf32>
    %82 = vector.shape_cast %81 : vector<64x8xf32> to vector<8x8x8xf32>
    %83 = arith.truncf %82 : vector<8x8x8xf32> to vector<8x8x8xbf16>
    %84 = vector.extract_strided_slice %69 {offsets = [0, 0], sizes = [16, 8], strides = [1, 1]} : vector<16x32xf32> to vector<16x8xf32>
    %85 = vector.extract_strided_slice %69 {offsets = [0, 8], sizes = [16, 8], strides = [1, 1]} : vector<16x32xf32> to vector<16x8xf32>
    %86 = vector.extract_strided_slice %69 {offsets = [0, 16], sizes = [16, 8], strides = [1, 1]} : vector<16x32xf32> to vector<16x8xf32>
    %87 = vector.extract_strided_slice %69 {offsets = [0, 24], sizes = [16, 8], strides = [1, 1]} : vector<16x32xf32> to vector<16x8xf32>
    %88 = tpu.concatenate %84, %85, %86, %87 in 0 : vector<16x8xf32>, vector<16x8xf32>, vector<16x8xf32>, vector<16x8xf32> -> vector<64x8xf32>
    %89 = vector.shape_cast %88 : vector<64x8xf32> to vector<8x8x8xf32>
    %90 = arith.truncf %89 : vector<8x8x8xf32> to vector<8x8x8xbf16>
    %c0_33 = arith.constant 0 : index
    %c0_34 = arith.constant 0 : index
    %c0_35 = arith.constant 0 : index
    %91 = vector.load %arg2[%c0_33, %c0_34, %c0_35] : memref<2x8x8xf32, #tpu.memory_space<vmem>>, vector<2x8x8xf32>
    %92 = tpu.concatenate %91, %91, %91, %91 in 0 : vector<2x8x8xf32>, vector<2x8x8xf32>, vector<2x8x8xf32>, vector<2x8x8xf32> -> vector<8x8x8xf32>
    "tpu.trace_start"() <{level = 10 : i32, message = "btd,bsd->bts"}> : () -> ()
    %cst_36 = arith.constant dense<0.000000e+00> : vector<8x8x8xf32>
    %93 = tpu.matmul %76, %83, %cst_36 {dimension_numbers = #tpu.dot_dimension_numbers<[2], [2], [1], [1], [0, 0, 0, 1, 1, 1], [0], [0]>} : vector<8x8x8xbf16>, vector<8x8x8xbf16>, vector<8x8x8xf32> -> vector<8x8x8xf32>
    "tpu.trace_stop"() : () -> ()
    %cst_37 = arith.constant 0.353553385 : f32
    %94 = vector.broadcast %cst_37 : f32 to vector<8x8x8xf32>
    %95 = arith.mulf %93, %94 : vector<8x8x8xf32>
    %cst_38 = arith.constant 0.000000e+00 : f32
    %96 = vector.broadcast %cst_38 : f32 to vector<8x8x8xf32>
    %97 = arith.cmpf oeq, %92, %96 : vector<8x8x8xf32>
    %cst_39 = arith.constant -1.000000e+09 : f32
    %98 = vector.broadcast %cst_39 : f32 to vector<8x8x8xf32>
    %99 = arith.select %97, %98, %95 : vector<8x8x8xi1>, vector<8x8x8xf32>
    %cst_40 = arith.constant dense<0xFF800000> : vector<8x8xf32>
    %100 = vector.multi_reduction <maximumf>, %99, %cst_40 [2] : vector<8x8x8xf32> to vector<8x8xf32>
    %101 = vector.shape_cast %100 : vector<8x8xf32> to vector<8x8x1xf32>
    %102 = vector.broadcast %101 : vector<8x8x1xf32> to vector<8x8x8xf32>
    %103 = arith.subf %99, %102 : vector<8x8x8xf32>
    %104 = math.exp %103 : vector<8x8x8xf32>
    %cst_41 = arith.constant dense<0.000000e+00> : vector<8x8xf32>
    %105 = vector.multi_reduction <add>, %104, %cst_41 [2] : vector<8x8x8xf32> to vector<8x8xf32>
    %106 = vector.shape_cast %105 : vector<8x8xf32> to vector<8x8x1xf32>
    %107 = tpu.reciprocal %106 {approx = true} : vector<8x8x1xf32> -> vector<8x8x1xf32>
    %108 = vector.broadcast %107 : vector<8x8x1xf32> to vector<8x8x8xf32>
    %109 = arith.mulf %104, %108 : vector<8x8x8xf32>
    %110 = arith.truncf %109 : vector<8x8x8xf32> to vector<8x8x8xbf16>
    "tpu.trace_start"() <{level = 10 : i32, message = "bts,bsd->btd"}> : () -> ()
    %cst_42 = arith.constant dense<0.000000e+00> : vector<8x8x8xf32>
    %111 = tpu.matmul %110, %90, %cst_42 {dimension_numbers = #tpu.dot_dimension_numbers<[2], [1], [1], [2], [0, 0, 0, 1, 1, 2], [0], [0]>} : vector<8x8x8xbf16>, vector<8x8x8xbf16>, vector<8x8x8xf32> -> vector<8x8x8xf32>
    "tpu.trace_stop"() : () -> ()
    %112 = vector.shape_cast %111 : vector<8x8x8xf32> to vector<64x8xf32>
    %113 = vector.extract_strided_slice %112 {offsets = [0, 0], sizes = [16, 8], strides = [1, 1]} : vector<64x8xf32> to vector<16x8xf32>
    %114 = vector.extract_strided_slice %112 {offsets = [16, 0], sizes = [16, 8], strides = [1, 1]} : vector<64x8xf32> to vector<16x8xf32>
    %115 = vector.extract_strided_slice %112 {offsets = [32, 0], sizes = [16, 8], strides = [1, 1]} : vector<64x8xf32> to vector<16x8xf32>
    %116 = vector.extract_strided_slice %112 {offsets = [48, 0], sizes = [16, 8], strides = [1, 1]} : vector<64x8xf32> to vector<16x8xf32>
    %117 = tpu.concatenate %113, %114, %115, %116 in 1 : vector<16x8xf32>, vector<16x8xf32>, vector<16x8xf32>, vector<16x8xf32> -> vector<16x32xf32>
    %118 = arith.truncf %117 : vector<16x32xf32> to vector<16x32xbf16>
    %c0_43 = arith.constant 0 : index
    %c0_44 = arith.constant 0 : index
    %119 = vector.load %arg13[%c0_43, %c0_44] : memref<32x32xf32, #tpu.memory_space<vmem>>, vector<32x32xf32>
    %120 = arith.truncf %119 : vector<32x32xf32> to vector<32x32xbf16>
    %cst_45 = arith.constant dense<0.000000e+00> : vector<16x32xf32>
    %121 = tpu.matmul %118, %120, %cst_45 {dimension_numbers = #tpu.dot_dimension_numbers<[1], [0], [0], [1], [0, 0, 1, 1], [], []>} : vector<16x32xbf16>, vector<32x32xbf16>, vector<16x32xf32> -> vector<16x32xf32>
    %c0_46 = arith.constant 0 : index
    %c0_47 = arith.constant 0 : index
    %122 = vector.load %arg14[%c0_46, %c0_47] : memref<1x32xf32, #tpu.memory_space<vmem>>, vector<1x32xf32>
    %123 = vector.broadcast %122 : vector<1x32xf32> to vector<16x32xf32>
    %124 = arith.addf %121, %123 : vector<16x32xf32>
    %125 = arith.truncf %48 : vector<16x32xf32> to vector<16x32xbf16>
    %c0_48 = arith.constant 0 : index
    %c0_49 = arith.constant 0 : index
    %126 = vector.load %arg15[%c0_48, %c0_49] : memref<32x128xf32, #tpu.memory_space<vmem>>, vector<32x128xf32>
    %127 = arith.truncf %126 : vector<32x128xf32> to vector<32x128xbf16>
    %cst_50 = arith.constant dense<0.000000e+00> : vector<16x128xf32>
    %128 = tpu.matmul %125, %127, %cst_50 {dimension_numbers = #tpu.dot_dimension_numbers<[1], [0], [0], [1], [0, 0, 1, 1], [], []>} : vector<16x32xbf16>, vector<32x128xbf16>, vector<16x128xf32> -> vector<16x128xf32>
    %c0_51 = arith.constant 0 : index
    %c0_52 = arith.constant 0 : index
    %129 = vector.load %arg16[%c0_51, %c0_52] : memref<1x128xf32, #tpu.memory_space<vmem>>, vector<1x128xf32>
    %130 = vector.broadcast %129 : vector<1x128xf32> to vector<16x128xf32>
    %131 = arith.addf %128, %130 : vector<16x128xf32>
    %cst_53 = arith.constant 5.000000e-01 : f32
    %132 = vector.broadcast %cst_53 : f32 to vector<16x128xf32>
    %133 = arith.mulf %132, %131 : vector<16x128xf32>
    %cst_54 = arith.constant 0.707106769 : f32
    %134 = vector.broadcast %cst_54 : f32 to vector<16x128xf32>
    %135 = arith.mulf %131, %134 : vector<16x128xf32>
    %136 = math.erf %135 : vector<16x128xf32>
    %cst_55 = arith.constant 1.000000e+00 : f32
    %137 = vector.broadcast %cst_55 : f32 to vector<16x128xf32>
    %138 = arith.addf %137, %136 : vector<16x128xf32>
    %139 = arith.mulf %133, %138 : vector<16x128xf32>
    %140 = arith.truncf %139 : vector<16x128xf32> to vector<16x128xbf16>
    %c0_56 = arith.constant 0 : index
    %c0_57 = arith.constant 0 : index
    %141 = vector.load %arg17[%c0_56, %c0_57] : memref<128x32xf32, #tpu.memory_space<vmem>>, vector<128x32xf32>
    %142 = arith.truncf %141 : vector<128x32xf32> to vector<128x32xbf16>
    %cst_58 = arith.constant dense<0.000000e+00> : vector<16x32xf32>
    %143 = tpu.matmul %140, %142, %cst_58 {dimension_numbers = #tpu.dot_dimension_numbers<[1], [0], [0], [1], [0, 0, 1, 1], [], []>} : vector<16x128xbf16>, vector<128x32xbf16>, vector<16x32xf32> -> vector<16x32xf32>
    %c0_59 = arith.constant 0 : index
    %c0_60 = arith.constant 0 : index
    %144 = vector.load %arg18[%c0_59, %c0_60] : memref<1x32xf32, #tpu.memory_space<vmem>>, vector<1x32xf32>
    %145 = vector.broadcast %144 : vector<1x32xf32> to vector<16x32xf32>
    %146 = arith.addf %143, %145 : vector<16x32xf32>
    %147 = arith.addf %0, %124 : vector<16x32xf32>
    %148 = arith.addf %147, %146 : vector<16x32xf32>
    %c0_61 = arith.constant 0 : index
    %c0_62 = arith.constant 0 : index
    %149 = vector.load %arg19[%c0_61, %c0_62] : memref<16x32xf32, #tpu.memory_space<vmem>>, vector<16x32xf32>
    tpu.vector_store %arg19[%c0_61, %c0_62], %148 {strides = array<i32>} : memref<16x32xf32, #tpu.memory_space<vmem>>, vector<16x32xf32>,
    return
  }
  func.func @transform_0(%arg0: i32) -> (i32, i32) {
    %c0_i32 = arith.constant 0 : i32
    %c0_i32_0 = arith.constant 0 : i32
    return %arg0, %c0_i32 : i32, i32
  }
  func.func @transform_1(%arg0: i32) -> (i32, i32, i32) {
    %c0_i32 = arith.constant 0 : i32
    %c0_i32_0 = arith.constant 0 : i32
    %c0_i32_1 = arith.constant 0 : i32
    return %arg0, %c0_i32, %c0_i32_0 : i32, i32, i32
  }
  func.func @transform_2(%arg0: i32) -> (i32, i32) {
    %c0_i32 = arith.constant 0 : i32
    %c0_i32_0 = arith.constant 0 : i32
    %c0_i32_1 = arith.constant 0 : i32
    return %c0_i32, %c0_i32_0 : i32, i32
  }
  func.func @transform_3(%arg0: i32) -> (i32, i32) {
    %c0_i32 = arith.constant 0 : i32
    %c0_i32_0 = arith.constant 0 : i32
    %c0_i32_1 = arith.constant 0 : i32
    return %c0_i32, %c0_i32_0 : i32, i32
  }
  func.func @transform_4(%arg0: i32) -> (i32, i32) {
    %c0_i32 = arith.constant 0 : i32
    %c0_i32_0 = arith.constant 0 : i32
    %c0_i32_1 = arith.constant 0 : i32
    return %c0_i32, %c0_i32_0 : i32, i32
  }
  func.func @transform_5(%arg0: i32) -> (i32, i32) {
    %c0_i32 = arith.constant 0 : i32
    %c0_i32_0 = arith.constant 0 : i32
    %c0_i32_1 = arith.constant 0 : i32
    return %c0_i32, %c0_i32_0 : i32, i32
  }
  func.func @transform_6(%arg0: i32) -> (i32, i32) {
    %c0_i32 = arith.constant 0 : i32
    %c0_i32_0 = arith.constant 0 : i32
    %c0_i32_1 = arith.constant 0 : i32
    return %c0_i32, %c0_i32_0 : i32, i32
  }
  func.func @transform_7(%arg0: i32) -> (i32, i32) {
    %c0_i32 = arith.constant 0 : i32
    %c0_i32_0 = arith.constant 0 : i32
    %c0_i32_1 = arith.constant 0 : i32
    return %c0_i32, %c0_i32_0 : i32, i32
  }
  func.func @transform_8(%arg0: i32) -> (i32, i32) {
    %c0_i32 = arith.constant 0 : i32
    %c0_i32_0 = arith.constant 0 : i32
    %c0_i32_1 = arith.constant 0 : i32
    return %c0_i32, %c0_i32_0 : i32, i32
  }
  func.func @transform_9(%arg0: i32) -> (i32, i32) {
    %c0_i32 = arith.constant 0 : i32
    %c0_i32_0 = arith.constant 0 : i32
    %c0_i32_1 = arith.constant 0 : i32
    return %c0_i32, %c0_i32_0 : i32, i32
  }
  func.func @transform_10(%arg0: i32) -> (i32, i32) {
    %c0_i32 = arith.constant 0 : i32
    %c0_i32_0 = arith.constant 0 : i32
    %c0_i32_1 = arith.constant 0 : i32
    return %c0_i32, %c0_i32_0 : i32, i32
  }
  func.func @transform_11(%arg0: i32) -> (i32, i32) {
    %c0_i32 = arith.constant 0 : i32
    %c0_i32_0 = arith.constant 0 : i32
    %c0_i32_1 = arith.constant 0 : i32
    return %c0_i32, %c0_i32_0 : i32, i32
  }
  func.func @transform_12(%arg0: i32) -> (i32, i32) {
    %c0_i32 = arith.constant 0 : i32
    %c0_i32_0 = arith.constant 0 : i32
    %c0_i32_1 = arith.constant 0 : i32
    return %c0_i32, %c0_i32_0 : i32, i32
  }
  func.func @transform_13(%arg0: i32) -> (i32, i32) {
    %c0_i32 = arith.constant 0 : i32
    %c0_i32_0 = arith.constant 0 : i32
    %c0_i32_1 = arith.constant 0 : i32
    return %c0_i32, %c0_i32_0 : i32, i32
  }
  func.func @transform_14(%arg0: i32) -> (i32, i32) {
    %c0_i32 = arith.constant 0 : i32
    %c0_i32_0 = arith.constant 0 : i32
    %c0_i32_1 = arith.constant 0 : i32
    return %c0_i32, %c0_i32_0 : i32, i32
  }
  func.func @transform_15(%arg0: i32) -> (i32, i32) {
    %c0_i32 = arith.constant 0 : i32
    %c0_i32_0 = arith.constant 0 : i32
    %c0_i32_1 = arith.constant 0 : i32
    return %c0_i32, %c0_i32_0 : i32, i32
  }
  func.func @transform_16(%arg0: i32) -> (i32, i32) {
    %c0_i32 = arith.constant 0 : i32
    %c0_i32_0 = arith.constant 0 : i32
    %c0_i32_1 = arith.constant 0 : i32
    return %c0_i32, %c0_i32_0 : i32, i32
  }
  func.func @transform_17(%arg0: i32) -> (i32, i32) {
    %c0_i32 = arith.constant 0 : i32
    %c0_i32_0 = arith.constant 0 : i32
    %c0_i32_1 = arith.constant 0 : i32
    return %c0_i32, %c0_i32_0 : i32, i32
  }
  func.func @transform_18(%arg0: i32) -> (i32, i32) {
    %c0_i32 = arith.constant 0 : i32
    %c0_i32_0 = arith.constant 0 : i32
    return %arg0, %c0_i32 : i32, i32
  }
}

</mosaic_0001>

<bundles_post_ra>
// kernel: tpu_custom_call.1
= control target key start
LH: loop header
LB: loop body
LE: loop exit
PB: predicated region body
PF: predicated region fallthrough
CT: control target
= control target key end

     0   :  { %s1673_s0 = inlined_call_operand.hbm [shape: f32[16,32], index: 0, kind: input, shape index: {}]   ;;  %s1674_s1 = inlined_call_operand.hbm [shape: f32[2,8,8], index: 1, kind: input, shape index: {}]   ;;  %s1675_s2 = inlined_call_operand.vmem [shape: f32[1,32], index: 2, kind: input, shape index: {}]   ;;  %s1676_s3 = inlined_call_operand.hbm [shape: f32[1,32], index: 3, kind: input, shape index: {}]   ;;  %s1677_s4 = inlined_call_operand.vmem [shape: f32[1,32], index: 4, kind: input, shape index: {}]   ;;  %s1678_s5 = inlined_call_operand.vmem [shape: f32[1,32], index: 5, kind: input, shape index: {}]   ;;  %s1679_s6 = inlined_call_operand.vmem [shape: f32[32,32], index: 6, kind: input, shape index: {}]   ;;  %s1680_s7 = inlined_call_operand.vmem [shape: f32[1,32], index: 7, kind: input, shape index: {}]   ;;  %s1681_s8 = inlined_call_operand.vmem [shape: f32[32,32], index: 8, kind: input, shape index: {}]   ;;  %s1682_s9 = inlined_call_operand.vmem [shape: f32[1,32], index: 9, kind: input, shape index: {}]   ;;  %s1683_s10 = inlined_call_operand.vmem [shape: f32[32,32], index: 10, kind: input, shape index: {}]   ;;  %s1684_s11 = inlined_call_operand.vmem [shape: f32[1,32], index: 11, kind: input, shape index: {}]   ;;  %s1685_s12 = inlined_call_operand.vmem [shape: f32[32,32], index: 12, kind: input, shape index: {}]   ;;  %s1686_s13 = inlined_call_operand.vmem [shape: f32[1,32], index: 13, kind: input, shape index: {}]   ;;  %s1687_s14 = inlined_call_operand.vmem [shape: f32[32,128], index: 14, kind: input, shape index: {}]   ;;  %s1688_s15 = inlined_call_operand.vmem [shape: f32[1,128], index: 15, kind: input, shape index: {}]   ;;  %s1689_s16 = inlined_call_operand.vmem [shape: f32[128,32], index: 16, kind: input, shape index: {}]   ;;  %s1690_s17 = inlined_call_operand.vmem [shape: f32[1,32], index: 17, kind: input, shape index: {}]   ;;  %s1691_s18 = inlined_call_operand.hbm [shape: f32[16,32], index: 18, kind: output, shape index: {}]  }
   0x1   :  { %1692 = sst [smem:[#allocation12_spill]] %s1673_s0 }
   0x2   :  { %1693 = sst [smem:[#allocation13_spill]] %s1674_s1 }
   0x3   :  { %1694 = sst [smem:[#allocation14_spill]] %s1675_s2 }
   0x4   :  { %23 = vsyncpa [#allocation3], 0 }
   0x5   :  { %24 = vsyncpa [#allocation6], 0 }
   0x6   :  { %25 = vsyncpa [#allocation4], 0  ;;  %s1695_s29 = sld [smem:[#allocation13_spill]]  ;;  %s1237_s0 = smov [#allocation5]  }
   0x7   :  { %s45_s19 = sshll.u32 %s1237_s0, 4  ;;  %s1696_s21 = sld [smem:[#allocation12_spill]]  ;;  %s46_s19 = int_to_ptr.vmem [resolvable:$true] %s45_s19 }
   0x8   :  { %s1238_s2 = smov 128   ;;  %s1239_s23 = smov 8  }
   0x9   :  { %s1240_s24 = smov [#allocation2]   ;;  %s59_s28 = sshll.u32 %s1676_s3, 4  ;;  %s60_s28 = int_to_ptr.hbm [resolvable:$true] %s59_s28 }
   0xa   :  { %s32_s25 = sshll.u32 %s1240_s24, 4  ;;  %s33_s25 = int_to_ptr.vmem [resolvable:$true] %s32_s25 }
   0xc   :  { %s43_s30 = sshll.u32 %s1695_s29, 4  ;;  %s1241_s29 = smov [#allocation7]   ;;  %s44_s30 = int_to_ptr.hbm [resolvable:$true] %s43_s30 }
   0xd   :  { %s30_s22 = sshll.u32 %s1696_s21, 4  ;;  %s61_s0 = sshll.u32 %s1241_s29, 4  ;;  %s31_s22 = int_to_ptr.hbm [resolvable:$true] %s30_s22  ;;  %s62_s0 = int_to_ptr.vmem [resolvable:$true] %s61_s0 }
   0xe   :  { %51 = dma.hbm_to_vmem [thread:$0]  %s44_s30, 256, %s46_s19, [#allocation6], %s1238_s2, %s1238_s2, %s1239_s23  }
   0xf   :  { %38 = dma.hbm_to_vmem [thread:$0]  %s31_s22, 256, %s33_s25, [#allocation3], %s1238_s2, %s1238_s2, %s1239_s23  }
  0x10   :  { %64 = dma.hbm_to_vmem [thread:$0]  %s60_s28, 16, %s62_s0, [#allocation6]  }
  0x11   :  { %1231 = dma.done.wait [#allocation3], 256  }
  0x12   :  { %1232 = vsyncadd [#allocation3], 4294967040 }
  0x13   :  { %1233 = dma.done.wait [#allocation6], 272  }
  0x14   :  { %1234 = vsyncadd [#allocation6], 4294967024  ;;  %vm110_vm0 = vcmask 261120   ;;  %v106_v0 = vld [vmem:[#allocation2] sm:$0xff]  ;;  %v107_v2 = vld [vmem:[#allocation2 + $0x8] sm:$0xff]  ;;  %v1242_v4 = vmov 32.0  }
  0x15   :  { %v111_v1 = vsel %vm110_vm0, %v106_v0, 0.0  ;;  %v114_v3 = vsel %vm110_vm0, %v107_v2, 0.0  ;;  %1091 = vrcp.f32 %v1242_v4  ;;  %v187_v21 = vld [vmem:[%s1679_s6 + $0x10] sm:$0xff]  ;;  %v188_v22 = vld [vmem:[%s1679_s6 + $0x18] sm:$0xff]  ;;  %v185_v29 = vld [vmem:[%s1679_s6] sm:$0xff]  ;;  %s1697_s28 = sld [smem:[#allocation14_spill]] }
  0x16   :  { %112 = vadd.xlane.f32.xlu0 %v111_v1  ;;  %v214_v23 = vld [vmem:[%s1681_s8 + $0x10] sm:$0xff]  ;;  %v190_v24 = vpack.c.bf16 %v188_v22, %v187_v21  ;;  %v215_v25 = vld [vmem:[%s1681_s8 + $0x18] sm:$0xff]  ;;  %v186_v30 = vld [vmem:[%s1679_s6 + $0x8] sm:$0xff]  ;;  %vm346_vm8 = vcmask 64512   ;;  %s1243_s19 = smov 112   ;;  %vm616_vm9 = vcmask 1043456  }
  0x17   :  { %v217_v26 = vpack.c.bf16 %v215_v25, %v214_v23  ;;  %v212_v31 = vld [vmem:[%s1681_s8] sm:$0xff]  ;;  %v189_v32 = vpack.c.bf16 %v186_v30, %v185_v29  ;;  %v213_v33 = vld [vmem:[%s1681_s8 + $0x8] sm:$0xff]  ;;  %v238_v36 = vld [vmem:[%s1683_s10 + $0x10] sm:$0xff]  ;;  %s1246_s1 = smov 16   ;;  %s1247_s25 = smov 24  }
  0x18   :  { %204 = vmatpush.bf16.msra.mxu0 %v190_v24  ;;  %v216_v35 = vpack.c.bf16 %v213_v33, %v212_v31  ;;  %v239_v37 = vld [vmem:[%s1683_s10 + $0x18] sm:$0xff]  ;;  %v236_v38 = vld [vmem:[%s1683_s10] sm:$0xff]  ;;  %v237_v41 = vld [vmem:[%s1683_s10 + $0x8] sm:$0xff]  ;;  %s1248_s10 = smov [#allocation8]   ;;  %s997_s26 = sshll.u32 %s1691_s18, 4  ;;  %s998_s26 = int_to_ptr.hbm [resolvable:$true] %s997_s26 }
  0x19   :  { %228 = vmatpush.bf16.msra.mxu2 %v217_v26  ;;  %v241_v40 = vpack.c.bf16 %v239_v37, %v238_v36  ;;  %v240_v43 = vpack.c.bf16 %v237_v41, %v236_v38  ;;  %v1081_v57 = vld [vmem:[%s1677_s4] ss:$0 sm:$0xff] }
  0x1a   :  { %v1082_v62 = vld [vmem:[%s1678_s5] ss:$0 sm:$0xff] }
  0x1b   :  { %v1092_v5 = vpop.eup %1091  ;;  %v1083_v59 = vld [vmem:[%s1697_s28] ss:$0 sm:$0xff] }
  0x1c   :  { %v118_v6 = vmul.f32 32.0, %v1092_v5  ;;  %vm122_vm1 = vweird.f32 %v1092_v5  ;;  %205 = vmatpush.bf16.msra.mxu0 %v189_v32  ;;  %v1087_v29 = vld [vmem:[%s1684_s11] ss:$0 sm:$0xff] }
  0x1d   :  { %229 = vmatpush.bf16.msra.mxu2 %v216_v35 }
  0x1e   :  { %115 = vadd.xlane.f32.xlu0 %v114_v3  ;;  %v119_v7 = vsub.f32 1.0, %v118_v6 }
  0x20   :  { %v120_v8 = vmul.f32 %v1092_v5, %v119_v7 }
  0x21   :  { %252 = vmatpush.bf16.msrb.mxu2 %v241_v40 }
  0x22   :  { %v121_v9 = vadd.f32 %v1092_v5, %v120_v8 }
  0x24   :  { %v123_v10 = vsel %vm122_vm1, %v1092_v5, %v121_v9 }
  0x25   :  { %253 = vmatpush.bf16.msrb.mxu2 %v240_v43 }
  0x89   :  { %v113_v11 = vpop.xlane.xlu0 %112 }
  0x8a   :  { %v124_v12 = vmul.f32 %v123_v10, %v113_v11 }
  0x8c   :  { %v126_v13 = vsub.f32 %v106_v0, %v124_v12  ;;  %v1086_v12 = vld [vmem:[%s1682_s9] ss:$0 sm:$0xff]  ;;  %s1244_s9 = smov 120  }
  0x8e   :  { %v128_v14 = vmul.f32 %v126_v13, %v126_v13 }
  0x90   :  { %v130_v15 = vsel %vm110_vm0, %v128_v14, 0.0  ;;  %v1085_v14 = vld [vmem:[%s1680_s7] ss:$0 sm:$0xff]  ;;  %s1245_s7 = smov 104  }
  0x91   :  { %131 = vadd.xlane.f32.xlu1 %v130_v15  ;;  %v116_v16 = vpop.xlane.xlu0 %115 }
  0x92   :  { %v125_v17 = vmul.f32 %v123_v10, %v116_v16 }
  0x94   :  { %v127_v18 = vsub.f32 %v107_v2, %v125_v17  ;;  %v1084_v2 = vld [vmem:[#allocation7] ss:$0 sm:$0xff] }
  0x96   :  { %v129_v19 = vmul.f32 %v127_v18, %v127_v18 }
  0x98   :  { %v133_v20 = vsel %vm110_vm0, %v129_v19, 0.0 }
  0x99   :  { %134 = vadd.xlane.f32.xlu1 %v133_v20 }
 0x104   :  { %v132_v27 = vpop.xlane.xlu1 %131 }
 0x105   :  { %v136_v28 = vmul.f32 %v132_v27, %v123_v10 }
 0x107   :  { %v138_v34 = vadd.f32 1e-05, %v136_v28 }
 0x109   :  { %1093 = vrsqrt.f32 %v138_v34  ;;  %vm146_vm3 = vweird.f32 %v138_v34 }
 0x10c   :  { %v135_v39 = vpop.xlane.xlu1 %134 }
 0x10d   :  { %v137_v42 = vmul.f32 %v135_v39, %v123_v10 }
 0x10f   :  { %v1094_v44 = vpop.eup %1093  ;;  %v139_v45 = vadd.f32 1e-05, %v137_v42 }
 0x110   :  { %v141_v46 = vmul.f32 %v1094_v44, %v138_v34  ;;  %vm147_vm2 = vweird.f32 %v1094_v44 }
 0x111   :  { %1095 = vrsqrt.f32 %v139_v45  ;;  %vm148_vm4 = vmor %vm146_vm3, %vm147_vm2  ;;  %vm156_vm6 = vweird.f32 %v139_v45 }
 0x112   :  { %v142_v47 = vmul.f32 %v1094_v44, %v141_v46 }
 0x114   :  { %v143_v48 = vmul.f32 0.5, %v142_v47 }
 0x116   :  { %v144_v49 = vsub.f32 1.5, %v143_v48 }
 0x117   :  { %v1096_v50 = vpop.eup %1095 }
 0x118   :  { %v145_v51 = vmul.f32 %v1094_v44, %v144_v49  ;;  %v151_v52 = vmul.f32 %v1096_v50, %v139_v45  ;;  %vm157_vm5 = vweird.f32 %v1096_v50 }
 0x119   :  { %vm158_vm7 = vmor %vm156_vm6, %vm157_vm5  ;;  %vm792_vm5 = vcmask 130048   ;;  %vm795_vm6 = vcmask 195584  }
 0x11a   :  { %v152_v53 = vmul.f32 %v1096_v50, %v151_v52  ;;  %v149_v54 = vsel %vm148_vm4, %v1094_v44, %v145_v51 }
 0x11b   :  { %v160_v58 = vmul.f32 %v149_v54, %v126_v13 }
 0x11c   :  { %v153_v55 = vmul.f32 0.5, %v152_v53 }
 0x11d   :  { %v177_v63 = vmul.f32 %v1081_v57, %v160_v58  ;;  %v165_v1 = vmul.f32 %v1083_v59, %v160_v58 }
 0x11e   :  { %v154_v56 = vsub.f32 1.5, %v153_v55 }
 0x11f   :  { %v1408_v5 = vadd.f32 %v1082_v62, %v177_v63  ;;  %v170_v7 = vadd.f32 %v1084_v2, %v165_v1 }
 0x120   :  { %v155_v60 = vmul.f32 %v1096_v50, %v154_v56 }
 0x122   :  { %v159_v61 = vsel %vm158_vm7, %v1096_v50, %v155_v60 }
 0x123   :  { %v161_v0 = vmul.f32 %v159_v61, %v127_v18 }
 0x125   :  { %v178_v3 = vmul.f32 %v1081_v57, %v161_v0  ;;  %v166_v4 = vmul.f32 %v1083_v59, %v161_v0 }
 0x127   :  { %v1410_v6 = vadd.f32 %v1082_v62, %v178_v3  ;;  %v171_v8 = vadd.f32 %v1084_v2, %v166_v4  ;;  %v1455_v3 = vld [vmem:[#allocation5] sm:$0xff]  ;;  %v345_v4 = vld [vmem:[#allocation5 + $0x8] sm:$0xff] }
 0x128   :  { %vm507_vm10 = vcmp.eq.f32.partialorder %v1455_v3, 0.0  ;;  %vm508_vm11 = vcmp.eq.f32.partialorder %v345_v4, 0.0 }
 0x129   :  { %v184_v9 = vpack.c.bf16 %v171_v8, %v170_v7  ;;  %v826_v10 = vpack.c.bf16 %v1410_v6, %v1408_v5 }
 0x12b   :  { %1011 = vmatmul.msk.bf16.vlgmr.msra.gmra.mxu0 %vm110_vm0, %v184_v9  ;;  %1012 = vmatmul.msk.bf16.vlgmr.msra.gmra.mxu2 %vm110_vm0, %v184_v9 }
 0x13b   :  { %1013 = vmatmul.msk.bf16.vlgmr.msrb.gmra.mxu2 %vm110_vm0, %v184_v9 }
 0x1a8   :  { %v207_v11 = vpop.f32.mrf.mxu0 }
 0x1a9   :  { %v208_v21 = vadd.f32 %v1085_v14, %v207_v11 }
 0x1ab   :  { %v280_v24 = vpack.c.bf16 %v208_v21, %v208_v21 }
 0x1ae   :  { %v231_v13 = vpop.f32.mrf.mxu2 }
 0x1af   :  { %v232_v15 = vadd.f32 %v1086_v12, %v231_v13 }
 0x1b0   :  { %v209_v16 = vpop.f32.mrf.mxu0 }
 0x1b1   :  { %v210_v17 = vadd.f32 %v1085_v14, %v209_v16  ;;  %296 = vrot.lane.b32.xlu2 %v232_v15, %s1243_s19  ;;  %v308_v18 = vpack.c.bf16 %v232_v15, %v232_v15 }
 0x1b3   :  { %270 = vrot.lane.b32.xlu0 %v210_v17, %s1243_s19  ;;  %v351_v19 = vsel %vm346_vm8, %v308_v18, 0  ;;  %v1046_v20 = vpack.i.bf16 %v232_v15, %v210_v17  ;;  %v281_v28 = vpack.c.bf16 %v210_v17, %v210_v17 }
 0x1b4   :  { %360 = vmatpush.bf16.xpose.msra.mxu3 %v351_v19 }
 0x1b5   :  { %1047 = vrot.lane.b32.xlu1 %v1046_v20, %s1244_s9 }
 0x1b6   :  { %v233_v22 = vpop.f32.mrf.mxu2 }
 0x1b7   :  { %v234_v23 = vadd.f32 %v1086_v12, %v233_v22 }
 0x1b9   :  { %298 = vrot.lane.b32.xlu2 %v234_v23, %s1243_s19  ;;  %v309_v25 = vpack.c.bf16 %v234_v23, %v234_v23 }
 0x1bb   :  { %268 = vrot.lane.b32.xlu0 %v208_v21, %s1243_s19  ;;  %1014 = vmatmul.msk.bf16.vlgmr.msra.gmra.mxu3 %vm346_vm8, %v280_v24  ;;  %v370_v26 = vsel %vm346_vm8, %v309_v25, 0 }
 0x1bc   :  { %379 = vmatpush.bf16.xpose.msrb.mxu0 %v370_v26 }
 0x1bd   :  { %302 = vrot.lane.b32.xlu1 %v232_v15, %s1245_s7 }
 0x1be   :  { %v255_v27 = vpop.f32.mrf.mxu2 }
 0x1bf   :  { %v256_v31 = vadd.f32 %v1087_v29, %v255_v27 }
 0x1c1   :  { %292 = vrot.lane.b32.xlu2 %v234_v23, %s1244_s9  ;;  %v336_v35 = vpack.c.bf16 %v256_v31, %v256_v31 }
 0x1c3   :  { %1015 = vmatmul.msk.bf16.vlgmr.msrb.gmra.mxu0 %vm346_vm8, %v281_v28  ;;  %274 = vrot.lane.b32.xlu0 %v208_v21, %s1245_s7  ;;  %v618_v38 = vsel %vm616_vm9, %v336_v35, 0 }
 0x1c6   :  { %v257_v30 = vpop.f32.mrf.mxu2 }
 0x1c7   :  { %v258_v32 = vadd.f32 %v1087_v29, %v257_v30 }
 0x1c9   :  { %262 = vrot.lane.b32.xlu2 %v208_v21, %s1244_s9  ;;  %v1439_v33 = vpack.i.bf16 %v256_v31, %v258_v32  ;;  %v337_v40 = vpack.c.bf16 %v258_v32, %v258_v32 }
 0x1cb   :  { %v637_v43 = vsel %vm616_vm9, %v337_v40, 0 }
 0x1d1   :  { %304 = vrot.lane.b32.xlu2 %v234_v23, %s1245_s7 }
 0x1d9   :  { %276 = vrot.lane.b32.xlu2 %v210_v17, %s1245_s7 }
 0x20b   :  { %v297_v34 = vpop.permute.xlu2 %296 }
 0x20c   :  { %v312_v36 = vpack.c.bf16 %v297_v34, %v297_v34 }
 0x20e   :  { %v427_v37 = vsel %vm346_vm8, %v312_v36, 0 }
 0x20f   :  { %436 = vmatpush.bf16.xpose.msrb.mxu3 %v427_v37 }
 0x213   :  { %v299_v39 = vpop.permute.xlu2 %298 }
 0x214   :  { %v313_v41 = vpack.c.bf16 %v299_v39, %v299_v39 }
 0x216   :  { %v446_v42 = vsel %vm346_vm8, %v313_v41, 0 }
 0x217   :  { %627 = vmatpush.bf16.msra.mxu3 %v618_v38  ;;  %455 = vmatpush.bf16.xpose.msra.mxu0 %v446_v42 }
 0x21b   :  { %v293_v44 = vpop.permute.xlu2 %292 }
 0x21c   :  { %v311_v45 = vpack.c.bf16 %v293_v44, %v293_v44 }
 0x21e   :  { %v408_v46 = vsel %vm346_vm8, %v311_v45, 0 }
 0x21f   :  { %646 = vmatpush.bf16.msrb.mxu0 %v637_v43  ;;  %417 = vmatpush.bf16.xpose.msra.mxu2 %v408_v46 }
 0x223   :  { %v263_v47 = vpop.permute.xlu2 %262 }
 0x224   :  { %v282_v63 = vpack.c.bf16 %v263_v47, %v263_v47 }
 0x225   :  { %v271_v48 = vpop.permute.xlu0 %270 }
 0x226   :  { %v285_v49 = vpack.c.bf16 %v271_v48, %v271_v48 }
 0x227   :  { %v1048_v50 = vpop.permute.xlu1 %1047 }
 0x228   :  { %v1050_v51 = vunpack.i.h.bf16 %v1048_v50  ;;  %v1049_v52 = vunpack.i.l.bf16 %v1048_v50  ;;  %1019 = vmatmul.msk.bf16.vlgmr.msra.gmra.mxu0 %vm346_vm8, %v285_v49 }
 0x22a   :  { %v283_v53 = vpack.c.bf16 %v1049_v52, %v1049_v52  ;;  %v310_v54 = vpack.c.bf16 %v1050_v51, %v1050_v51 }
 0x22b   :  { %v305_v55 = vpop.permute.xlu2 %304 }
 0x22c   :  { %v315_v56 = vpack.c.bf16 %v305_v55, %v305_v55  ;;  %1017 = vmatmul.msk.bf16.vlgmr.msra.gmra.mxu2 %vm346_vm8, %v283_v53  ;;  %v389_v57 = vsel %vm346_vm8, %v310_v54, 0 }
 0x22d   :  { %398 = vmatpush.bf16.xpose.msra.mxu1 %v389_v57  ;;  %v269_v58 = vpop.permute.xlu0 %268 }
 0x22e   :  { %v484_v59 = vsel %vm346_vm8, %v315_v56, 0  ;;  %v284_v60 = vpack.c.bf16 %v269_v58, %v269_v58 }
 0x22f   :  { %v303_v61 = vpop.permute.xlu1 %302  ;;  %493 = vmatpush.bf16.xpose.msrb.mxu2 %v484_v59 }
 0x230   :  { %v314_v62 = vpack.c.bf16 %v303_v61, %v303_v61  ;;  %1018 = vmatmul.msk.bf16.vlgmr.msrb.gmra.mxu3 %vm346_vm8, %v284_v60 }
 0x232   :  { %v465_v0 = vsel %vm346_vm8, %v314_v62, 0 }
 0x233   :  { %v277_v1 = vpop.permute.xlu2 %276 }
 0x234   :  { %1016 = vmatmul.msk.bf16.vlgmr.msra.gmra.mxu1 %vm346_vm8, %v282_v63  ;;  %v287_v2 = vpack.c.bf16 %v277_v1, %v277_v1 }
 0x235   :  { %474 = vmatpush.bf16.xpose.msrb.mxu1 %v465_v0  ;;  %v275_v8 = vpop.permute.xlu0 %274 }
 0x236   :  { %v286_v14 = vpack.c.bf16 %v275_v8, %v275_v8 }
 0x23c   :  { %1021 = vmatmul.msk.bf16.vlgmr.msrb.gmra.mxu2 %vm346_vm8, %v287_v2 }
 0x23e   :  { %v362_v7 = vpop.f32.mrf.mxu3 }
 0x23f   :  { %v499_v9 = vmul.f32 0.35355338, %v362_v7 }
 0x240   :  { %v381_v11 = vpop.f32.mrf.mxu0 }
 0x241   :  { %v500_v12 = vmul.f32 0.35355338, %v381_v11  ;;  %v509_v13 = vsel %vm507_vm10, -1e+09, %v499_v9 }
 0x242   :  { %v517_v15 = vsel %vm346_vm8, %v509_v13, -inf }
 0x243   :  { %518 = vmax.xlane.f32.xlu0 %v517_v15  ;;  %v510_v16 = vsel %vm508_vm11, -1e+09, %v500_v12 }
 0x244   :  { %1020 = vmatmul.msk.bf16.vlgmr.msrb.gmra.mxu1 %vm346_vm8, %v286_v14  ;;  %v520_v17 = vsel %vm346_vm8, %v510_v16, -inf }
 0x245   :  { %521 = vmax.xlane.f32.xlu2 %v520_v17 }
 0x246   :  { %v364_v18 = vpop.f32.mrf.mxu3 }
 0x248   :  { %v383_v19 = vpop.f32.mrf.mxu0 }
 0x2a5   :  { %v457_v20 = vpop.f32.mrf.mxu0 }
 0x2a6   :  { %v504_v32 = vmul.f32 0.35355338, %v457_v20 }
 0x2a8   :  { %v514_v43 = vsel %vm508_vm11, -1e+09, %v504_v32 }
 0x2a9   :  { %v532_v46 = vsel %vm346_vm8, %v514_v43, -inf }
 0x2ad   :  { %v459_v21 = vpop.f32.mrf.mxu0 }
 0x2af   :  { %v419_v22 = vpop.f32.mrf.mxu2 }
 0x2b0   :  { %v502_v23 = vmul.f32 0.35355338, %v419_v22 }
 0x2b1   :  { %v400_v24 = vpop.f32.mrf.mxu1 }
 0x2b2   :  { %v501_v25 = vmul.f32 0.35355338, %v400_v24  ;;  %v1466_v26 = vsel %vm508_vm11, -1e+09, %v502_v23 }
 0x2b3   :  { %v438_v27 = vpop.f32.mrf.mxu3  ;;  %v526_v28 = vsel %vm346_vm8, %v1466_v26, -inf }
 0x2b4   :  { %v503_v29 = vmul.f32 0.35355338, %v438_v27  ;;  %527 = vmax.xlane.f32.xlu2 %v526_v28  ;;  %v511_v30 = vsel %vm507_vm10, -1e+09, %v501_v25 }
 0x2b5   :  { %v523_v31 = vsel %vm346_vm8, %v511_v30, -inf }
 0x2b6   :  { %524 = vmax.xlane.f32.xlu1 %v523_v31  ;;  %v519_v34 = vpop.xlane.xlu0 %518  ;;  %v513_v35 = vsel %vm507_vm10, -1e+09, %v503_v29 }
 0x2b7   :  { %v541_v36 = vsub.f32 %v509_v13, %v519_v34  ;;  %v421_v37 = vpop.f32.mrf.mxu2  ;;  %v529_v38 = vsel %vm346_vm8, %v513_v35, -inf }
 0x2b8   :  { %v522_v39 = vpop.xlane.xlu2 %521  ;;  %530 = vmax.xlane.f32.xlu0 %v529_v38 }
 0x2b9   :  { %v549_v40 = vmul.f32 1.442695, %v541_v36  ;;  %v542_v41 = vsub.f32 %v510_v16, %v522_v39  ;;  %v402_v42 = vpop.f32.mrf.mxu1 }
 0x2bb   :  { %1097 = vpow2.f32 %v549_v40  ;;  %v440_v44 = vpop.f32.mrf.mxu3  ;;  %v551_v45 = vmul.f32 1.442695, %v542_v41 }
 0x2bd   :  { %1099 = vpow2.f32 %v551_v45 }
 0x2be   :  { %533 = vmax.xlane.f32.xlu1 %v532_v46 }
 0x2bf   :  { %v495_v47 = vpop.f32.mrf.mxu2 }
 0x2c0   :  { %v506_v48 = vmul.f32 0.35355338, %v495_v47 }
 0x2c1   :  { %v1098_v49 = vpop.eup %1097  ;;  %v476_v50 = vpop.f32.mrf.mxu1 }
 0x2c2   :  { %v505_v51 = vmul.f32 0.35355338, %v476_v50  ;;  %v565_v52 = vsel %vm346_vm8, %v1098_v49, 0.0  ;;  %v516_v53 = vsel %vm508_vm11, -1e+09, %v506_v48 }
 0x2c3   :  { %566 = vadd.xlane.f32.xlu0 %v565_v52  ;;  %v538_v54 = vsel %vm346_vm8, %v516_v53, -inf  ;;  %v1100_v57 = vpop.eup %1099 }
 0x2c4   :  { %539 = vmax.xlane.f32.xlu2 %v538_v54  ;;  %v515_v55 = vsel %vm507_vm10, -1e+09, %v505_v51  ;;  %v568_v60 = vsel %vm346_vm8, %v1100_v57, 0.0  ;;  %v829_v54 = vld [vmem:[%s1687_s14 + $0x10] sm:$0xff] }
 0x2c5   :  { %v535_v56 = vsel %vm346_vm8, %v515_v55, -inf }
 0x2c6   :  { %536 = vmax.xlane.f32.xlu1 %v535_v56 }
 0x2c7   :  { %v497_v58 = vpop.f32.mrf.mxu2 }
 0x2c8   :  { %v827_v58 = vld [vmem:[%s1687_s14] sm:$0xff] }
 0x2c9   :  { %v478_v59 = vpop.f32.mrf.mxu1 }
 0x2cb   :  { %569 = vadd.xlane.f32.xlu0 %v568_v60 }
 0x2df   :  { %1052 = vrot.lane.b32.xlu1 %v1439_v33, %s1243_s19  ;;  %1057 = vrot.lane.b32.xlu0 %v1439_v33, %s1244_s9 }
 0x327   :  { %v528_v2 = vpop.xlane.xlu2 %527 }
 0x328   :  { %v544_v19 = vsub.f32 %v1466_v26, %v528_v2 }
 0x329   :  { %v525_v61 = vpop.xlane.xlu1 %524 }
 0x32a   :  { %v543_v62 = vsub.f32 %v511_v30, %v525_v61  ;;  %v555_v25 = vmul.f32 1.442695, %v544_v19 }
 0x32b   :  { %v531_v63 = vpop.xlane.xlu0 %530 }
 0x32c   :  { %v553_v0 = vmul.f32 1.442695, %v543_v62  ;;  %v545_v1 = vsub.f32 %v513_v35, %v531_v63 }
 0x32e   :  { %1101 = vpow2.f32 %v553_v0  ;;  %v557_v3 = vmul.f32 1.442695, %v545_v1 }
 0x330   :  { %1103 = vpow2.f32 %v557_v3 }
 0x331   :  { %v534_v4 = vpop.xlane.xlu1 %533 }
 0x332   :  { %v546_v7 = vsub.f32 %v514_v43, %v534_v4 }
 0x334   :  { %v1489_v8 = vpop.eup %1101  ;;  %v559_v12 = vmul.f32 1.442695, %v546_v7 }
 0x335   :  { %v571_v9 = vsel %vm346_vm8, %v1489_v8, 0.0 }
 0x336   :  { %572 = vadd.xlane.f32.xlu2 %v571_v9  ;;  %v567_v11 = vpop.xlane.xlu0 %566  ;;  %v1493_v16 = vpop.eup %1103 }
 0x337   :  { %1105 = vrcp.f32 %v567_v11  ;;  %v540_v13 = vpop.xlane.xlu2 %539  ;;  %v577_v22 = vsel %vm346_vm8, %v1493_v16, 0.0 }
 0x338   :  { %v548_v14 = vsub.f32 %v516_v53, %v540_v13  ;;  %1107 = vpow2.f32 %v559_v12 }
 0x339   :  { %v537_v15 = vpop.xlane.xlu1 %536 }
 0x33a   :  { %v563_v17 = vmul.f32 1.442695, %v548_v14  ;;  %v547_v18 = vsub.f32 %v515_v55, %v537_v15  ;;  %v830_v55 = vld [vmem:[%s1687_s14 + $0x18] sm:$0xff] }
 0x33b   :  { %v832_v56 = vpack.c.bf16 %v830_v55, %v829_v54  ;;  %v953_v55 = vld [vmem:[%s1689_s16 + $0x50] sm:$0xff] }
 0x33c   :  { %1109 = vpow2.f32 %v563_v17  ;;  %v561_v20 = vmul.f32 1.442695, %v547_v18 }
 0x33d   :  { %v1106_v21 = vpop.eup %1105 }
 0x33e   :  { %v597_v23 = vmul.f32 %v1106_v21, %v1098_v49  ;;  %1111 = vpow2.f32 %v561_v20  ;;  %578 = vadd.xlane.f32.xlu2 %v577_v22  ;;  %v570_v24 = vpop.xlane.xlu0 %569  ;;  %v1108_v28 = vpop.eup %1107 }
 0x33f   :  { %1113 = vrcp.f32 %v570_v24  ;;  %v580_v34 = vsel %vm346_vm8, %v1108_v28, 0.0 }
 0x340   :  { %v605_v27 = vpack.c.bf16 %v597_v23, %v597_v23  ;;  %1115 = vpow2.f32 %v555_v25 }
 0x342   :  { %v1498_v29 = vpop.eup %1109  ;;  %1022 = vmatmul.msk.bf16.vlgmr.msra.gmra.mxu3 %vm346_vm8, %v605_v27 }
 0x343   :  { %v586_v26 = vsel %vm346_vm8, %v1498_v29, 0.0 }
 0x344   :  { %v1503_v30 = vpop.eup %1111  ;;  %587 = vadd.xlane.f32.xlu1 %v586_v26 }
 0x345   :  { %v1114_v31 = vpop.eup %1113  ;;  %v583_v32 = vsel %vm346_vm8, %v1503_v30, 0.0 }
 0x346   :  { %v598_v35 = vmul.f32 %v1114_v31, %v1100_v57  ;;  %584 = vadd.xlane.f32.xlu0 %v583_v32  ;;  %581 = vadd.xlane.f32.xlu2 %v580_v34  ;;  %v1116_v37 = vpop.eup %1115 }
 0x347   :  { %v574_v38 = vsel %vm346_vm8, %v1116_v37, 0.0 }
 0x348   :  { %v606_v36 = vpack.c.bf16 %v598_v35, %v598_v35 }
 0x34a   :  { %1023 = vmatmul.msk.bf16.vlgmr.msrb.gmra.mxu0 %vm346_vm8, %v606_v36 }
 0x34e   :  { %575 = vadd.xlane.f32.xlu2 %v574_v38 }
 0x351   :  { %v1053_v39 = vpop.permute.xlu1 %1052  ;;  %v1058_v40 = vpop.permute.xlu0 %1057 }
 0x352   :  { %v1055_v41 = vunpack.i.h.bf16 %v1053_v39  ;;  %v1054_v42 = vunpack.i.l.bf16 %v1053_v39  ;;  %v1060_v43 = vunpack.i.h.bf16 %v1058_v40  ;;  %v1059_v44 = vunpack.i.l.bf16 %v1058_v40 }
 0x354   :  { %v340_v45 = vpack.c.bf16 %v1055_v41, %v1055_v41  ;;  %v341_v46 = vpack.c.bf16 %v1054_v42, %v1054_v42  ;;  %v338_v47 = vpack.c.bf16 %v1060_v43, %v1060_v43  ;;  %v339_v48 = vpack.c.bf16 %v1059_v44, %v1059_v44  ;;  %v1088_v41 = vld [vmem:[%s1688_s15] ss:$0 sm:$0xff] }
 0x356   :  { %v656_v49 = vsel %vm616_vm9, %v338_v47, 0  ;;  %v675_v50 = vsel %vm616_vm9, %v339_v48, 0  ;;  %v694_v51 = vsel %vm616_vm9, %v340_v45, 0  ;;  %v713_v52 = vsel %vm616_vm9, %v341_v46, 0  ;;  %v955_v46 = vld [vmem:[%s1689_s16 + $0x60] sm:$0xff]  ;;  %v956_v47 = vld [vmem:[%s1689_s16 + $0x68] sm:$0xff] }
 0x357   :  { %665 = vmatpush.bf16.msra.mxu1 %v656_v49  ;;  %684 = vmatpush.bf16.msra.mxu2 %v675_v50  ;;  %v965_v50 = vpack.c.bf16 %v956_v47, %v955_v46 }
 0x358   :  { %703 = vmatpush.bf16.msrb.mxu3 %v694_v51  ;;  %722 = vmatpush.bf16.msra.mxu0 %v713_v52 }
 0x35c   :  { %846 = vmatpush.bf16.msrb.mxu0 %v832_v56  ;;  %v954_v56 = vld [vmem:[%s1689_s16 + $0x58] sm:$0xff] }
 0x366   :  { %1062 = vrot.lane.b32.xlu2 %v1439_v33, %s1245_s7  ;;  %v828_v33 = vld [vmem:[%s1687_s14 + $0x8] sm:$0xff] }
 0x367   :  { %v831_v61 = vpack.c.bf16 %v828_v33, %v827_v58 }
 0x369   :  { %847 = vmatpush.bf16.msrb.mxu0 %v831_v61 }
 0x3a9   :  { %v573_v53 = vpop.xlane.xlu2 %572 }
 0x3aa   :  { %1117 = vrcp.f32 %v573_v53 }
 0x3b0   :  { %v1118_v57 = vpop.eup %1117 }
 0x3b1   :  { %v599_v59 = vmul.f32 %v1118_v57, %v1489_v8  ;;  %v579_v60 = vpop.xlane.xlu2 %578 }
 0x3b2   :  { %1119 = vrcp.f32 %v579_v60 }
 0x3b3   :  { %v607_v62 = vpack.c.bf16 %v599_v59, %v599_v59  ;;  %v964_v59 = vpack.c.bf16 %v954_v56, %v953_v55 }
 0x3b5   :  { %1024 = vmatmul.msk.bf16.vlgmr.msra.gmra.mxu1 %vm346_vm8, %v607_v62 }
 0x3b7   :  { %v588_v19 = vpop.xlane.xlu1 %587 }
 0x3b8   :  { %v1120_v63 = vpop.eup %1119 }
 0x3b9   :  { %v601_v0 = vmul.f32 %v1120_v63, %v1493_v16  ;;  %v582_v1 = vpop.xlane.xlu2 %581  ;;  %v585_v4 = vpop.xlane.xlu0 %584  ;;  %v951_v63 = vld [vmem:[%s1689_s16 + $0x40] sm:$0xff] }
 0x3ba   :  { %1121 = vrcp.f32 %v582_v1 }
 0x3bb   :  { %v609_v2 = vpack.c.bf16 %v601_v0, %v601_v0  ;;  %v952_v0 = vld [vmem:[%s1689_s16 + $0x48] sm:$0xff] }
 0x3bd   :  { %1026 = vmatmul.msk.bf16.vlgmr.msrb.gmra.mxu3 %vm346_vm8, %v609_v2  ;;  %v963_v2 = vpack.c.bf16 %v952_v0, %v951_v63 }
 0x3c0   :  { %v1122_v3 = vpop.eup %1121 }
 0x3c1   :  { %v602_v7 = vmul.f32 %v1122_v3, %v1108_v28  ;;  %v576_v9 = vpop.xlane.xlu2 %575 }
 0x3c2   :  { %1123 = vrcp.f32 %v576_v9 }
 0x3c3   :  { %v610_v8 = vpack.c.bf16 %v602_v7, %v602_v7  ;;  %1125 = vrcp.f32 %v585_v4 }
 0x3c4   :  { %1127 = vrcp.f32 %v588_v19 }
 0x3c5   :  { %v1532_v11 = vpop.f32.mrf.mxu3  ;;  %1027 = vmatmul.msk.bf16.vlgmr.msra.gmra.mxu0 %vm346_vm8, %v610_v8 }
 0x3c7   :  { %v1535_v12 = vpop.f32.mrf.mxu0 }
 0x3c8   :  { %v1124_v13 = vpop.eup %1123 }
 0x3c9   :  { %v1126_v14 = vpop.eup %1125  ;;  %v600_v15 = vmul.f32 %v1124_v13, %v1116_v37  ;;  %v1063_v16 = vpop.permute.xlu2 %1062 }
 0x3ca   :  { %v1065_v17 = vunpack.i.h.bf16 %v1063_v16  ;;  %v1064_v18 = vunpack.i.l.bf16 %v1063_v16  ;;  %v603_v21 = vmul.f32 %v1126_v14, %v1503_v30  ;;  %v1128_v31 = vpop.eup %1127  ;;  %v949_v14 = vld [vmem:[%s1689_s16 + $0x30] sm:$0xff] }
 0x3cb   :  { %v608_v20 = vpack.c.bf16 %v600_v15, %v600_v15  ;;  %v604_v30 = vmul.f32 %v1128_v31, %v1498_v29  ;;  %v958_v29 = vld [vmem:[%s1689_s16 + $0x78] sm:$0xff] }
 0x3cc   :  { %v342_v22 = vpack.c.bf16 %v1065_v17, %v1065_v17  ;;  %v343_v23 = vpack.c.bf16 %v1064_v18, %v1064_v18  ;;  %v611_v26 = vpack.c.bf16 %v603_v21, %v603_v21  ;;  %v950_v15 = vld [vmem:[%s1689_s16 + $0x38] sm:$0xff] }
 0x3cd   :  { %v631_v24 = vpop.f32.mrf.mxu3  ;;  %1025 = vmatmul.msk.bf16.vlgmr.msra.gmra.mxu2 %vm346_vm8, %v608_v20  ;;  %v612_v32 = vpack.c.bf16 %v604_v30, %v604_v30  ;;  %v962_v17 = vpack.c.bf16 %v950_v15, %v949_v14 }
 0x3ce   :  { %v732_v25 = vsel %vm616_vm9, %v342_v22, 0  ;;  %v751_v27 = vsel %vm616_vm9, %v343_v23, 0  ;;  %v947_v24 = vld [vmem:[%s1689_s16 + $0x20] sm:$0xff] }
 0x3cf   :  { %v650_v28 = vpop.f32.mrf.mxu0  ;;  %741 = vmatpush.bf16.msrb.mxu1 %v732_v25  ;;  %760 = vmatpush.bf16.msrb.mxu2 %v751_v27  ;;  %v948_v25 = vld [vmem:[%s1689_s16 + $0x28] sm:$0xff] }
 0x3d0   :  { %v961_v28 = vpack.c.bf16 %v948_v25, %v947_v24 }
 0x3d2   :  { %1028 = vmatmul.msk.bf16.vlgmr.msrb.gmra.mxu1 %vm346_vm8, %v611_v26 }
 0x3d5   :  { %1031 = vmatmul.msk.bf16.vlgmr.msrb.gmra.mxu0 %vm110_vm0, %v826_v10  ;;  %v957_v10 = vld [vmem:[%s1689_s16 + $0x70] sm:$0xff] }
 0x3d6   :  { %v966_v44 = vpack.c.bf16 %v958_v29, %v957_v10  ;;  %v943_v29 = vld [vmem:[%s1689_s16] sm:$0xff] }
 0x3d8   :  { %971 = vmatpush.bf16.msra.mxu1 %v966_v44  ;;  %v944_v44 = vld [vmem:[%s1689_s16 + $0x8] sm:$0xff] }
 0x3d9   :  { %v959_v47 = vpack.c.bf16 %v944_v44, %v943_v29 }
 0x3dc   :  { %972 = vmatpush.bf16.msra.mxu1 %v965_v50 }
 0x3dd   :  { %1029 = vmatmul.msk.bf16.vlgmr.msrb.gmra.mxu2 %vm346_vm8, %v612_v32 }
 0x3e0   :  { %973 = vmatpush.bf16.msra.mxu1 %v964_v59 }
 0x3e4   :  { %974 = vmatpush.bf16.msra.mxu1 %v963_v2 }
 0x3e8   :  { %975 = vmatpush.bf16.msra.mxu1 %v962_v17 }
 0x3ec   :  { %976 = vmatpush.bf16.msra.mxu1 %v961_v28 }
 0x432   :  { %v667_v34 = vpop.f32.mrf.mxu1 }
 0x43a   :  { %v669_v35 = vpop.f32.mrf.mxu1 }
 0x440   :  { %v705_v36 = vpop.f32.mrf.mxu3 }
 0x442   :  { %v724_v37 = vpop.f32.mrf.mxu0 }
 0x443   :  { %v1071_v52 = vpack.i.bf16 %v724_v37, %v705_v36  ;;  %v945_v37 = vld [vmem:[%s1689_s16 + $0x10] sm:$0xff] }
 0x448   :  { %v707_v38 = vpop.f32.mrf.mxu3 }
 0x449   :  { %v946_v38 = vld [vmem:[%s1689_s16 + $0x18] sm:$0xff] }
 0x44a   :  { %v726_v39 = vpop.f32.mrf.mxu0 }
 0x44f   :  { %v743_v40 = vpop.f32.mrf.mxu1 }
 0x450   :  { %v686_v42 = vpop.f32.mrf.mxu2 }
 0x451   :  { %v1066_v5 = vpack.i.bf16 %v686_v42, %v667_v34 }
 0x452   :  { %v849_v6 = vpop.f32.mrf.mxu0 }
 0x453   :  { %v1557_v43 = vadd.f32 %v1088_v41, %v849_v6  ;;  %1067 = vrot.lane.b32.xlu2 %v1066_v5, %s1239_s23 }
 0x455   :  { %v1561_v45 = vmul.f32 0.70710677, %v1557_v43 }
 0x457   :  { %v858_v48 = vmul.f32 %v1561_v45, %v1561_v45  ;;  %v745_v49 = vpop.f32.mrf.mxu1 }
 0x458   :  { %v688_v51 = vpop.f32.mrf.mxu2 }
 0x459   :  { %v1571_v53 = vmin.f32 %v858_v48, 16.0 }
 0x45a   :  { %v851_v54 = vpop.f32.mrf.mxu0 }
 0x45b   :  { %v860_v57 = vmul.f32 2.1237322e-06, %v1571_v53  ;;  %v871_v58 = vmul.f32 3.8918573e-05, %v1571_v53  ;;  %v1581_v33 = vadd.f32 %v1088_v41, %v851_v54  ;;  %1072 = vrot.lane.b32.xlu2 %v1071_v52, %s1246_s1 }
 0x45d   :  { %v861_v60 = vadd.f32 0.00028619796, %v860_v57  ;;  %v872_v61 = vadd.f32 0.001143296, %v871_v58  ;;  %v1584_v62 = vmul.f32 0.70710677, %v1581_v33 }
 0x45f   :  { %v873_v1 = vmul.f32 %v872_v61, %v1571_v53  ;;  %v898_v3 = vmul.f32 %v1584_v62, %v1584_v62  ;;  %v862_v7 = vmul.f32 %v861_v60, %v1571_v53 }
 0x460   :  { %v762_v4 = vpop.f32.mrf.mxu2 }
 0x461   :  { %v874_v9 = vadd.f32 0.014752088, %v873_v1  ;;  %v1076_v8 = vpack.i.bf16 %v762_v4, %v743_v40  ;;  %v1596_v13 = vmin.f32 %v898_v3, 16.0  ;;  %v863_v20 = vadd.f32 0.0036580483, %v862_v7 }
 0x462   :  { %v960_v40 = vpack.c.bf16 %v946_v38, %v945_v37  ;;  %v799_v37 = vld [vmem:[%s1685_s12] sm:$0xff] }
 0x463   :  { %v875_v16 = vmul.f32 %v874_v9, %v1571_v53  ;;  %1077 = vrot.lane.b32.xlu1 %v1076_v8, %s1247_s25  ;;  %v900_v18 = vmul.f32 2.1237322e-06, %v1596_v13  ;;  %v911_v19 = vmul.f32 3.8918573e-05, %v1596_v13  ;;  %v864_v32 = vmul.f32 %v863_v20, %v1571_v53  ;;  %s995_s25 = sshll.u32 %s1248_s10, 4  ;;  %s996_s25 = int_to_ptr.vmem [resolvable:$true] %s995_s25 }
 0x464   :  { %977 = vmatpush.bf16.msra.mxu1 %v960_v40 }
 0x465   :  { %v876_v21 = vadd.f32 0.112945676, %v875_v16  ;;  %v901_v22 = vadd.f32 0.00028619796, %v900_v18  ;;  %v912_v23 = vadd.f32 0.001143296, %v911_v19 }
 0x466   :  { %v865_v42 = vadd.f32 0.05243302, %v864_v32 }
 0x467   :  { %v877_v27 = vmul.f32 %v876_v21, %v1571_v53  ;;  %v902_v26 = vmul.f32 %v901_v22, %v1596_v13  ;;  %v913_v31 = vmul.f32 %v912_v23, %v1596_v13 }
 0x468   :  { %v764_v30 = vpop.f32.mrf.mxu2  ;;  %v866_v48 = vmul.f32 %v865_v42, %v1571_v53  ;;  %978 = vmatpush.bf16.msra.mxu1 %v959_v47 }
 0x469   :  { %v878_v34 = vadd.f32 0.4994258, %v877_v27  ;;  %v903_v35 = vadd.f32 0.0036580483, %v902_v26  ;;  %v914_v36 = vadd.f32 0.014752088, %v913_v31 }
 0x46a   :  { %v867_v54 = vadd.f32 0.18741608, %v866_v48  ;;  %v854_v26 = vmul.f32 0.5, %v1557_v43  ;;  %v855_v31 = vmul.f32 0.5, %v1581_v33  ;;  %v800_v33 = vld [vmem:[%s1685_s12 + $0x8] sm:$0xff] }
 0x46b   :  { %v879_v39 = vmul.f32 %v878_v34, %v1571_v53  ;;  %v915_v41 = vmul.f32 %v914_v36, %v1596_v13  ;;  %v904_v6 = vmul.f32 %v903_v35, %v1596_v13  ;;  %v801_v36 = vld [vmem:[%s1685_s12 + $0x10] sm:$0xff]  ;;  %v803_v38 = vpack.c.bf16 %v800_v33, %v799_v37 }
 0x46c   :  { %v868_v59 = vmul.f32 %v867_v54, %v1571_v53  ;;  %v1090_v54 = vld [vmem:[%s1686_s13] ss:$0 sm:$0xff] }
 0x46d   :  { %v880_v5 = vadd.f32 1.0, %v879_v39  ;;  %v916_v10 = vadd.f32 0.112945676, %v915_v41  ;;  %v905_v49 = vadd.f32 0.05243302, %v904_v6 }
 0x46e   :  { %v869_v2 = vadd.f32 1.1283791, %v868_v59 }
 0x46f   :  { %1129 = vrcp.f32 %v880_v5  ;;  %v917_v46 = vmul.f32 %v916_v10, %v1596_v13  ;;  %v906_v56 = vmul.f32 %v905_v49, %v1596_v13  ;;  %v892_v61 = vand.u32 2147483648, %v880_v5 }
 0x470   :  { %v890_v0 = vand.u32 2147483647, %v880_v5  ;;  %vm886_vm13 = vweird.f32 %v880_v5  ;;  %v870_v15 = vmul.f32 %v869_v2, %v1561_v45  ;;  %v1134_v2 = vld [vmem:[#allocation2 + $0x8] sm:$0xff] }
 0x471   :  { %v918_v50 = vadd.f32 0.4994258, %v917_v46  ;;  %v907_v63 = vadd.f32 0.18741608, %v906_v56  ;;  %v893_v7 = vor.u32 1.1754944e-38, %v892_v61 }
 0x472   :  { %vm891_vm15 = vcmp.eq.f32.partialorder %v890_v0, 8.507059e+37 }
 0x473   :  { %v919_v51 = vmul.f32 %v918_v50, %v1596_v13  ;;  %v908_v9 = vmul.f32 %v907_v63, %v1596_v13 }
 0x475   :  { %v1130_v52 = vpop.eup %1129  ;;  %v920_v57 = vadd.f32 1.0, %v919_v51  ;;  %v909_v16 = vadd.f32 1.1283791, %v908_v9 }
 0x476   :  { %v882_v55 = vmul.f32 %v1130_v52, %v880_v5  ;;  %vm887_vm12 = vweird.f32 %v1130_v52 }
 0x477   :  { %1131 = vrcp.f32 %v920_v57  ;;  %vm888_vm14 = vmor %vm886_vm13, %vm887_vm12  ;;  %v932_v17 = vand.u32 2147483648, %v920_v57  ;;  %v930_v20 = vand.u32 2147483647, %v920_v57  ;;  %vm926_vm2 = vweird.f32 %v920_v57 }
 0x478   :  { %v883_v58 = vsub.f32 1.0, %v882_v55  ;;  %v910_v24 = vmul.f32 %v909_v16, %v1584_v62  ;;  %v802_v62 = vld [vmem:[%s1685_s12 + $0x18] sm:$0xff] }
 0x479   :  { %v933_v22 = vor.u32 1.1754944e-38, %v932_v17  ;;  %vm931_vm4 = vcmp.eq.f32.partialorder %v930_v20, 8.507059e+37  ;;  %v804_v43 = vpack.c.bf16 %v802_v62, %v801_v36 }
 0x47a   :  { %v884_v60 = vmul.f32 %v1130_v52, %v883_v58  ;;  %v1133_v58 = vld [vmem:[#allocation2] sm:$0xff] }
 0x47b   :  { %818 = vmatpush.bf16.msra.mxu3 %v804_v43 }
 0x47c   :  { %v885_v1 = vadd.f32 %v1130_v52, %v884_v60 }
 0x47d   :  { %v1132_v3 = vpop.eup %1131 }
 0x47e   :  { %v889_v4 = vsel %vm888_vm14, %v1130_v52, %v885_v1  ;;  %v922_v8 = vmul.f32 %v1132_v3, %v920_v57  ;;  %vm927_vm1 = vweird.f32 %v1132_v3 }
 0x47f   :  { %v894_v14 = vsel %vm891_vm15, %v893_v7, %v889_v4  ;;  %vm928_vm3 = vmor %vm926_vm2, %vm927_vm1  ;;  %819 = vmatpush.bf16.msra.mxu3 %v803_v38 }
 0x480   :  { %v923_v53 = vsub.f32 1.0, %v922_v8  ;;  %v895_v18 = vmul.f32 %v894_v14, %v870_v15 }
 0x482   :  { %v924_v19 = vmul.f32 %v1132_v3, %v923_v53  ;;  %v1032_v23 = vclamps-f32 %v895_v18, 1.0 }
 0x484   :  { %v925_v21 = vadd.f32 %v1132_v3, %v924_v19  ;;  %v938_v28 = vadd.f32 1.0, %v1032_v23 }
 0x486   :  { %v929_v13 = vsel %vm928_vm3, %v1132_v3, %v925_v21  ;;  %v940_v32 = vmul.f32 %v938_v28, %v854_v26 }
 0x487   :  { %v934_v25 = vsel %vm931_vm4, %v933_v22, %v929_v13 }
 0x488   :  { %v935_v27 = vmul.f32 %v934_v25, %v910_v24 }
 0x48a   :  { %v1033_v45 = vclamps-f32 %v935_v27, 1.0 }
 0x48c   :  { %v939_v30 = vadd.f32 1.0, %v1033_v45 }
 0x48e   :  { %v941_v34 = vmul.f32 %v939_v30, %v855_v31 }
 0x490   :  { %v942_v35 = vpack.c.bf16 %v941_v34, %v940_v32 }
 0x492   :  { %979 = vmatmul.bf16.vlgmr.msra.gmra.mxu1 %v942_v35 }
 0x4ad   :  { %v1068_v39 = vpop.permute.xlu2 %1067 }
 0x4ae   :  { %v1070_v41 = vunpack.i.h.bf16 %v1068_v39  ;;  %v1069_v42 = vunpack.i.l.bf16 %v1068_v39 }
 0x4b0   :  { %v791_v29 = vsel %vm346_vm8, %v1535_v12, %v1070_v41  ;;  %v790_v44 = vsel %vm346_vm8, %v1532_v11, %v1069_v42  ;;  %v1089_v12 = vld [vmem:[%s1690_s17] ss:$0 sm:$0xff] }
 0x4b5   :  { %v1073_v40 = vpop.permute.xlu2 %1072 }
 0x4b6   :  { %v1075_v5 = vunpack.i.h.bf16 %v1073_v40  ;;  %v1074_v6 = vunpack.i.l.bf16 %v1073_v40 }
 0x4b8   :  { %v794_v48 = vsel %vm792_vm5, %v791_v29, %v1075_v5  ;;  %v793_v49 = vsel %vm792_vm5, %v790_v44, %v1074_v6 }
 0x4d5   :  { %v1078_v10 = vpop.permute.xlu1 %1077 }
 0x4d6   :  { %v1080_v46 = vunpack.i.h.bf16 %v1078_v10  ;;  %v1079_v47 = vunpack.i.l.bf16 %v1078_v10 }
 0x4d8   :  { %v796_v50 = vsel %vm795_vm6, %v793_v49, %v1079_v47  ;;  %v797_v51 = vsel %vm795_vm6, %v794_v48, %v1080_v46 }
 0x4d9   :  { %v798_v52 = vpack.c.bf16 %v797_v51, %v796_v50 }
 0x4db   :  { %1030 = vmatmul.msk.bf16.vlgmr.msra.gmra.mxu3 %vm110_vm0, %v798_v52 }
 0x50f   :  { %v980_v55 = vpop.f32.mrf.mxu1 }
 0x510   :  { %v981_v57 = vadd.f32 %v1089_v12, %v980_v55 }
 0x517   :  { %v982_v61 = vpop.f32.mrf.mxu1 }
 0x518   :  { %v983_v1 = vadd.f32 %v1089_v12, %v982_v61 }
 0x55e   :  { %v821_v56 = vpop.f32.mrf.mxu3 }
 0x55f   :  { %v822_v11 = vadd.f32 %v1090_v54, %v821_v56 }
 0x561   :  { %v985_v59 = vadd.f32 %v1133_v58, %v822_v11 }
 0x563   :  { %v987_v60 = vadd.f32 %v985_v59, %v981_v57 }
 0x565   :  { %989 = vst.msk [vmem:[#allocation8] sm:$0xff] %vm110_vm0, %v987_v60 }
 0x566   :  { %v823_v63 = vpop.f32.mrf.mxu3 }
 0x567   :  { %v824_v0 = vadd.f32 %v1090_v54, %v823_v63 }
 0x569   :  { %v986_v3 = vadd.f32 %v1134_v2, %v824_v0 }
 0x56b   :  { %v988_v4 = vadd.f32 %v986_v3, %v983_v1 }
 0x56d   :  { %990 = vst.msk [vmem:[#allocation8 + $0x8] sm:$0xff] %vm110_vm0, %v988_v4 }
 0x56e   :  { %1003 = dma.vmem_to_hbm [thread:$0]  %s996_s25, 256, %s998_s26, [#allocation4], %s1238_s2, %s1238_s2, %s1239_s23  }
 0x56f   :  { %1235 = dma.done.wait [#allocation4], 256  }
 0x570   :  { %1236 = vsyncadd [#allocation4], 4294967040 }
 0x571   :  { %1008 = vsyncpa [#allocation3], 1 }
 0x572   :  { %1009 = vsyncpa [#allocation6], 1 }
 0x573   :  { %1010 = vsyncpa [#allocation4], 1 }

</bundles_post_ra>
